<compile_context>
chip_gen: v7x
topology: tpu7x:2x2x1
jax: 0.10.0
libtpu: 0.0.40
codegen_flags: <defaults>
</compile_context>

<pallas_src>
import jax
import jax.numpy as jnp
from jax.experimental import pallas as pl
from jax.experimental.pallas import tpu as pltpu

LN_EPS = 1e-5        # nn.LayerNorm default eps
CHAN_LN_EPS = 1e-6   # ChanLayerNorm float32 clamp (var.clamp(min=eps))


def calc_same_padding(kernel_size):
    pad = kernel_size // 2
    return (pad, pad - (kernel_size + 1) % 2)


def _round_up(x, m):
    return ((x + m - 1) // m) * m


def _layernorm(x, gamma, beta, eps=LN_EPS):
    mean = jnp.mean(x, axis=-1, keepdims=True)
    var = jnp.mean((x - mean) ** 2, axis=-1, keepdims=True)   # unbiased=False
    return (x - mean) * jax.lax.rsqrt(var + eps) * gamma + beta


def _full_spec(a):
    # Whole-array block, constant index map (grid is 1-D) -> weight stays resident.
    nd = a.ndim
    return pl.BlockSpec(a.shape, lambda b, nd=nd: (0,) * nd)


# --------------------------- fused ConformerBlock kernel ---------------------------
def make_conformer_kernel(BT, N, D, heads, dim_head, conv_inner, ksize,
                          pad_l, off, lpad, mm_dtype):
    inner_attn = heads * dim_head
    scale = dim_head ** (-0.5)
    M = BT * N                                   # folded matmul row count

    def kernel(x_ref,
               # FF1
               ff1_g, ff1_bt, ff1_w1, ff1_b1, ff1_w2, ff1_b2,
               # Attention
               at_g, at_bt, wq_ref, wkv_ref, wo_ref, bo_ref,
               # Conv module
               cv_g, cv_bt, w_pw1, b_pw1, w_dw, b_dw, chan_g, w_pw2, b_pw2,
               # FF2
               ff2_g, ff2_bt, ff2_w1, ff2_b1, ff2_w2, ff2_b2,
               # Post norm
               pn_g, pn_bt,
               o_ref,
               pad_scratch):
        # Fold (BT, N) into the matmul M dim.  N is a multiple of 8 in practice,
        # so this is a free relabel of the sublane axis.
        x = x_ref[...].reshape(M, D)

        def mm(a, w_ref):
            return jnp.dot(a.astype(mm_dtype), w_ref[...],
                           preferred_element_type=jnp.float32)

        # ----------------- FF1: x = 0.5 * FF(LN(x)) + x -----------------
        h = _layernorm(x, ff1_g[...], ff1_bt[...])
        h = mm(h, ff1_w1) + ff1_b1[...]
        h = h * jax.nn.sigmoid(h)                               # Swish / SiLU
        h = mm(h, ff1_w2) + ff1_b2[...]
        x = 0.5 * h + x

        # ----------------- Attention: x = Attn(LN(x)) + x -----------------
        h = _layernorm(x, at_g[...], at_bt[...])
        q = mm(h, wq_ref) * scale                               # scale q once (M, H*dh)
        kv = mm(h, wkv_ref)                                     # (M, 2*H*dh)
        q3 = q.reshape(BT, N, inner_attn)
        k3 = kv[:, :inner_attn].reshape(BT, N, inner_attn)
        v3 = kv[:, inner_attn:].reshape(BT, N, inner_attn)
        head_outs = []
        for hh in range(heads):                                 # short static unroll
            sl = slice(hh * dim_head, (hh + 1) * dim_head)
            qs = q3[..., sl].astype(mm_dtype)
            ks = k3[..., sl].astype(mm_dtype)
            vs = v3[..., sl]
            s = jnp.einsum('bqd,bkd->bqk', qs, ks,              # no .T materialized
                           preferred_element_type=jnp.float32)
            s = s - jnp.max(s, axis=-1, keepdims=True)
            p = jnp.exp(s)
            p = p / jnp.sum(p, axis=-1, keepdims=True)          # exact softmax
            head_outs.append(
                jnp.einsum('bqk,bkd->bqd', p.astype(mm_dtype), vs.astype(mm_dtype),
                           preferred_element_type=jnp.float32))
        o = jnp.concatenate(head_outs, axis=-1).reshape(M, inner_attn)
        x = mm(o, wo_ref) + bo_ref[...] + x                     # ONE output projection

        # ----------------- Conv module: x = Conv(x) + x -----------------
        h = _layernorm(x, cv_g[...], cv_bt[...])
        # pointwise Conv1d(dim, 2*inner, 1) == matmul over channels
        h = mm(h, w_pw1) + b_pw1[...]
        a = h[:, :conv_inner]
        gate = h[:, conv_inner:]
        h = a * jax.nn.sigmoid(gate)                            # GLU over channels
        h3 = h.reshape(BT, N, conv_inner)

        # depthwise Conv1d(inner, inner, K, groups=inner), "same" padding.
        # Halo zeroing only once: scratch persists across grid iterations and the
        # live-region store never touches the halos.
        if off > 0 or (lpad - off - N) > 0:
            @pl.when(pl.program_id(0) == 0)
            def _zero_halos():
                if off > 0:
                    pad_scratch[:, 0:off, :] = jnp.zeros(
                        (BT, off, conv_inner), jnp.float32)
                if (lpad - off - N) > 0:
                    pad_scratch[:, off + N:lpad, :] = jnp.zeros(
                        (BT, lpad - off - N, conv_inner), jnp.float32)

        # sublane-aligned live-region write (off is a multiple of 8)
        pad_scratch[:, off:off + N, :] = h3
        xp = pad_scratch[...]                                   # (BT, lpad, inner)
        wdw = w_dw[...]                                         # (K, inner), f32
        acc = jnp.zeros((BT, N, conv_inner), jnp.float32)
        shift0 = off - pad_l                                    # extra alignment pad
        for kk in range(ksize):                                 # static tap loop
            sh = (lpad - (kk + shift0)) % lpad
            # rolled[:, n, :] == xp[:, n + kk + shift0, :]  (no wrap by construction)
            rolled = pltpu.roll(xp, shift=sh, axis=1)
            acc = acc + rolled[:, 0:N, :] * wdw[kk:kk + 1, :]
        acc = acc.reshape(M, conv_inner) + b_dw[...]
        acc = acc * jax.nn.sigmoid(acc)                         # Swish
        # ChanLayerNorm (over channels; channels are the last dim here), gamma-only
        mean = jnp.mean(acc, axis=-1, keepdims=True)
        var = jnp.mean((acc - mean) ** 2, axis=-1, keepdims=True)
        acc = (acc - mean) * jax.lax.rsqrt(jnp.maximum(var, CHAN_LN_EPS)) * chan_g[...]
        # pointwise Conv1d(inner, dim, 1)
        h = mm(acc, w_pw2) + b_pw2[...]
        x = h + x

        # ----------------- FF2: x = 0.5 * FF(LN(x)) + x -----------------
        h = _layernorm(x, ff2_g[...], ff2_bt[...])
        h = mm(h, ff2_w1) + ff2_b1[...]
        h = h * jax.nn.sigmoid(h)
        h = mm(h, ff2_w2) + ff2_b2[...]
        x = 0.5 * h + x

        # ----------------- post LayerNorm -----------------
        o_ref[...] = _layernorm(x, pn_g[...], pn_bt[...]).reshape(BT, N, D)

    return kernel


def conformer_block_forward(x, params, *, heads, dim_head, ff_mult,
                            conv_expansion, conv_kernel,
                            matmul_dtype=jnp.float32, batch_tile=None):
    B, N, D = x.shape
    ff_inner = D * ff_mult
    conv_inner = D * conv_expansion
    pad_l, pad_r = calc_same_padding(conv_kernel)
    inner_attn = heads * dim_head

    # Fold enough batch elements per grid step so the matmul M dim (BT*N) reaches
    # ~128 rows (full MXU height) when the batch allows; otherwise fold all of B.
    # TODO(synk): on v7x (2 TensorCores) keep at least 2 grid steps when B allows.
    if batch_tile is None:
        batch_tile = B
        for d in range(1, B + 1):
            if B % d == 0 and d * N >= 128:
                batch_tile = d
                break
    assert B % batch_tile == 0, "batch_tile must divide B"
    BT = batch_tile

    off = _round_up(pad_l, 8)                 # sublane-aligned live-region offset
    lpad = _round_up(off + N + pad_r, 8)      # padded time length (multiple of 8)

    kern = make_conformer_kernel(BT, N, D, heads, dim_head, conv_inner,
                                 conv_kernel, pad_l, off, lpad, matmul_dtype)

    ff1, at, cv, ff2, pn = (params["ff1"], params["attn"], params["conv"],
                            params["ff2"], params["post"])

    def c(w):  # cast MXU weight matrices (bf16 on v6e/v7x); stats weights stay f32
        return w.astype(matmul_dtype)

    weights = [
        ff1["ln_g"], ff1["ln_b"], c(ff1["w1"]), ff1["b1"], c(ff1["w2"]), ff1["b2"],
        at["ln_g"], at["ln_b"], c(at["wq"]), c(at["wkv"]), c(at["wo"]), at["bo"],
        cv["ln_g"], cv["ln_b"], c(cv["w_pw1"]), cv["b_pw1"], cv["w_dw"], cv["b_dw"],
        cv["chan_g"], c(cv["w_pw2"]), cv["b_pw2"],
        ff2["ln_g"], ff2["ln_b"], c(ff2["w1"]), ff2["b1"], c(ff2["w2"]), ff2["b2"],
        pn["ln_g"], pn["ln_b"],
    ]

    # Advisory cost estimate (flops / transcendentals / bytes) for XLA scheduling.
    flops_per_b = (
        8 * N * D * ff_inner                      # FF1 + FF2 matmuls
        + 2 * N * D * inner_attn                  # q proj
        + 4 * N * D * inner_attn                  # kv proj
        + 4 * heads * N * N * dim_head            # qk^T + pv
        + 2 * N * inner_attn * D                  # out proj
        + 4 * N * D * conv_inner                  # pw conv 1 (2*inner wide)
        + 2 * N * conv_inner * conv_kernel        # depthwise conv
        + 2 * N * conv_inner * D                  # pw conv 2
    )
    transc_per_b = 2 * N * ff_inner + heads * N * N + 3 * N * conv_inner
    weight_bytes = sum(int(w.size) * int(w.dtype.itemsize) for w in weights)
    cost = pl.CostEstimate(
        flops=int(B * flops_per_b),
        transcendentals=int(B * transc_per_b),
        bytes_accessed=int(2 * B * N * D * 4 + weight_bytes),
    )

    # Explicit VMEM budget (v7x: 64 MiB physical / 32 MiB scoped default).
    widest = max(D, ff_inner, 2 * conv_inner, 2 * inner_attn)
    footprint = (2 * weight_bytes                       # weights (double-buffered bound)
                 + 6 * BT * N * widest * 4              # live intermediates (rough)
                 + BT * lpad * conv_inner * 4           # conv halo scratch
                 + 4 * BT * N * D * 4)                  # in/out blocks, double-buffered
    vmem_limit = int(min(64 * 1024 * 1024, max(32 * 1024 * 1024, 2 * footprint)))

    return pl.pallas_call(
        kern,
        out_shape=jax.ShapeDtypeStruct((B, N, D), jnp.float32),
        grid=(B // BT,),
        in_specs=[pl.BlockSpec((BT, N, D), lambda b: (b, 0, 0))]
                 + [_full_spec(w) for w in weights],
        out_specs=pl.BlockSpec((BT, N, D), lambda b: (b, 0, 0)),
        scratch_shapes=[pltpu.VMEM((BT, lpad, conv_inner), jnp.float32)],
        compiler_params=pltpu.CompilerParams(
            dimension_semantics=("parallel",),
            vmem_limit_bytes=vmem_limit),
        cost_estimate=cost,
    )(x, *weights)


# ------------------------------- parameter setup ----------------------------------
def init_params(key, *, dim, heads, dim_head, ff_mult, conv_expansion, conv_kernel):
    inner_attn = heads * dim_head
    inner_conv = dim * conv_expansion
    keys = jax.random.split(key, 16)
    s = 0.05

    def rnd(k, shape):
        return jax.random.normal(k, shape, jnp.float32) * s

    ff = lambda k1, k2: {
        "ln_g": jnp.ones((1, dim), jnp.float32),
        "ln_b": jnp.zeros((1, dim), jnp.float32),
        "w1": rnd(k1, (dim, dim * ff_mult)),
        "b1": jnp.zeros((1, dim * ff_mult), jnp.float32),
        "w2": rnd(k2, (dim * ff_mult, dim)),
        "b2": jnp.zeros((1, dim), jnp.float32),
    }
    params = {
        "ff1": ff(keys[0], keys[1]),
        "ff2": ff(keys[2], keys[3]),
        "attn": {
            "ln_g": jnp.ones((1, dim), jnp.float32),
            "ln_b": jnp.zeros((1, dim), jnp.float32),
            "wq": rnd(keys[4], (dim, inner_attn)),
            "wkv": rnd(keys[5], (dim, 2 * inner_attn)),
            "wo": rnd(keys[6], (inner_attn, dim)),
            "bo": jnp.zeros((1, dim), jnp.float32),
        },
        "conv": {
            "ln_g": jnp.ones((1, dim), jnp.float32),
            "ln_b": jnp.zeros((1, dim), jnp.float32),
            "w_pw1": rnd(keys[7], (dim, 2 * inner_conv)),
            "b_pw1": jnp.zeros((1, 2 * inner_conv), jnp.float32),
            "w_dw": rnd(keys[8], (conv_kernel, inner_conv)),   # depthwise taps (K, C)
            "b_dw": jnp.zeros((1, inner_conv), jnp.float32),
            "chan_g": jnp.ones((1, inner_conv), jnp.float32),
            "w_pw2": rnd(keys[9], (inner_conv, dim)),
            "b_pw2": jnp.zeros((1, dim), jnp.float32),
        },
        "post": {
            "ln_g": jnp.ones((1, dim), jnp.float32),
            "ln_b": jnp.zeros((1, dim), jnp.float32),
        },
    }
    return params


if __name__ == "__main__":
    # Small ConformerBlock: dim=32, heads=2, dim_head=16, ff_mult=4,
    # conv_expansion_factor=2, conv_kernel_size=31; input (B=2, N=8, D=32).
    DIM, HEADS, DIM_HEAD, FF_MULT = 32, 2, 16, 4
    CONV_EXP, CONV_K = 2, 31
    B, N = 2, 8

    key = jax.random.PRNGKey(0)
    kx, kp = jax.random.split(key)
    x = jax.random.normal(kx, (B, N, DIM), jnp.float32)
    params = init_params(kp, dim=DIM, heads=HEADS, dim_head=DIM_HEAD,
                         ff_mult=FF_MULT, conv_expansion=CONV_EXP,
                         conv_kernel=CONV_K)

    out = conformer_block_forward(x, params, heads=HEADS, dim_head=DIM_HEAD,
                                  ff_mult=FF_MULT, conv_expansion=CONV_EXP,
                                  conv_kernel=CONV_K,
                                  matmul_dtype=jnp.float32)  # bf16 on v6e/v7x prod
    out = jax.block_until_ready(out)
    assert out.shape == (B, N, DIM) and bool(jnp.all(jnp.isfinite(out)))
    print("KERNEL_OK")
</pallas_src>

<mosaic_0001>
module attributes {stable_mosaic.version = 11 : i64} {
  func.func @kernel(%arg0: i32, %arg1: memref<2x8x32xf32, #tpu.memory_space<vmem>>, %arg2: memref<1x32xf32, #tpu.memory_space<vmem>>, %arg3: memref<1x32xf32, #tpu.memory_space<vmem>>, %arg4: memref<32x128xf32, #tpu.memory_space<vmem>>, %arg5: memref<1x128xf32, #tpu.memory_space<vmem>>, %arg6: memref<128x32xf32, #tpu.memory_space<vmem>>, %arg7: memref<1x32xf32, #tpu.memory_space<vmem>>, %arg8: memref<1x32xf32, #tpu.memory_space<vmem>>, %arg9: memref<1x32xf32, #tpu.memory_space<vmem>>, %arg10: memref<32x32xf32, #tpu.memory_space<vmem>>, %arg11: memref<32x64xf32, #tpu.memory_space<vmem>>, %arg12: memref<32x32xf32, #tpu.memory_space<vmem>>, %arg13: memref<1x32xf32, #tpu.memory_space<vmem>>, %arg14: memref<1x32xf32, #tpu.memory_space<vmem>>, %arg15: memref<1x32xf32, #tpu.memory_space<vmem>>, %arg16: memref<32x128xf32, #tpu.memory_space<vmem>>, %arg17: memref<1x128xf32, #tpu.memory_space<vmem>>, %arg18: memref<31x64xf32, #tpu.memory_space<vmem>>, %arg19: memref<1x64xf32, #tpu.memory_space<vmem>>, %arg20: memref<1x64xf32, #tpu.memory_space<vmem>>, %arg21: memref<64x32xf32, #tpu.memory_space<vmem>>, %arg22: memref<1x32xf32, #tpu.memory_space<vmem>>, %arg23: memref<1x32xf32, #tpu.memory_space<vmem>>, %arg24: memref<1x32xf32, #tpu.memory_space<vmem>>, %arg25: memref<32x128xf32, #tpu.memory_space<vmem>>, %arg26: memref<1x128xf32, #tpu.memory_space<vmem>>, %arg27: memref<128x32xf32, #tpu.memory_space<vmem>>, %arg28: memref<1x32xf32, #tpu.memory_space<vmem>>, %arg29: memref<1x32xf32, #tpu.memory_space<vmem>>, %arg30: memref<1x32xf32, #tpu.memory_space<vmem>>, %arg31: memref<2x8x32xf32, #tpu.memory_space<vmem>>, %arg32: memref<2x40x64xf32, #tpu.memory_space<vmem>>) attributes {dimension_semantics = [#tpu.dimension_semantics<parallel>], iteration_bounds = array<i64: 1>, scalar_prefetch = 0 : i64, scratch_operands = 1 : i64, tpu.core_type = #tpu.core_type<tc>, window_params = [{transform_indices = @transform_0, window_bounds = array<i64: 2, 8, 32>}, {pipeline_mode = #tpu.pipeline_mode<synchronous>, transform_indices = @transform_1, window_bounds = array<i64: 1, 32>}, {pipeline_mode = #tpu.pipeline_mode<synchronous>, transform_indices = @transform_2, window_bounds = array<i64: 1, 32>}, {pipeline_mode = #tpu.pipeline_mode<synchronous>, transform_indices = @transform_3, window_bounds = array<i64: 32, 128>}, {pipeline_mode = #tpu.pipeline_mode<synchronous>, transform_indices = @transform_4, window_bounds = array<i64: 1, 128>}, {pipeline_mode = #tpu.pipeline_mode<synchronous>, transform_indices = @transform_5, window_bounds = array<i64: 128, 32>}, {pipeline_mode = #tpu.pipeline_mode<synchronous>, transform_indices = @transform_6, window_bounds = array<i64: 1, 32>}, {pipeline_mode = #tpu.pipeline_mode<synchronous>, transform_indices = @transform_7, window_bounds = array<i64: 1, 32>}, {pipeline_mode = #tpu.pipeline_mode<synchronous>, transform_indices = @transform_8, window_bounds = array<i64: 1, 32>}, {pipeline_mode = #tpu.pipeline_mode<synchronous>, transform_indices = @transform_9, window_bounds = array<i64: 32, 32>}, {pipeline_mode = #tpu.pipeline_mode<synchronous>, transform_indices = @transform_10, window_bounds = array<i64: 32, 64>}, {pipeline_mode = #tpu.pipeline_mode<synchronous>, transform_indices = @transform_11, window_bounds = array<i64: 32, 32>}, {pipeline_mode = #tpu.pipeline_mode<synchronous>, transform_indices = @transform_12, window_bounds = array<i64: 1, 32>}, {pipeline_mode = #tpu.pipeline_mode<synchronous>, transform_indices = @transform_13, window_bounds = array<i64: 1, 32>}, {pipeline_mode = #tpu.pipeline_mode<synchronous>, transform_indices = @transform_14, window_bounds = array<i64: 1, 32>}, {pipeline_mode = #tpu.pipeline_mode<synchronous>, transform_indices = @transform_15, window_bounds = array<i64: 32, 128>}, {pipeline_mode = #tpu.pipeline_mode<synchronous>, transform_indices = @transform_16, window_bounds = array<i64: 1, 128>}, {pipeline_mode = #tpu.pipeline_mode<synchronous>, transform_indices = @transform_17, window_bounds = array<i64: 31, 64>}, {pipeline_mode = #tpu.pipeline_mode<synchronous>, transform_indices = @transform_18, window_bounds = array<i64: 1, 64>}, {pipeline_mode = #tpu.pipeline_mode<synchronous>, transform_indices = @transform_19, window_bounds = array<i64: 1, 64>}, {pipeline_mode = #tpu.pipeline_mode<synchronous>, transform_indices = @transform_20, window_bounds = array<i64: 64, 32>}, {pipeline_mode = #tpu.pipeline_mode<synchronous>, transform_indices = @transform_21, window_bounds = array<i64: 1, 32>}, {pipeline_mode = #tpu.pipeline_mode<synchronous>, transform_indices = @transform_22, window_bounds = array<i64: 1, 32>}, {pipeline_mode = #tpu.pipeline_mode<synchronous>, transform_indices = @transform_23, window_bounds = array<i64: 1, 32>}, {pipeline_mode = #tpu.pipeline_mode<synchronous>, transform_indices = @transform_24, window_bounds = array<i64: 32, 128>}, {pipeline_mode = #tpu.pipeline_mode<synchronous>, transform_indices = @transform_25, window_bounds = array<i64: 1, 128>}, {pipeline_mode = #tpu.pipeline_mode<synchronous>, transform_indices = @transform_26, window_bounds = array<i64: 128, 32>}, {pipeline_mode = #tpu.pipeline_mode<synchronous>, transform_indices = @transform_27, window_bounds = array<i64: 1, 32>}, {pipeline_mode = #tpu.pipeline_mode<synchronous>, transform_indices = @transform_28, window_bounds = array<i64: 1, 32>}, {pipeline_mode = #tpu.pipeline_mode<synchronous>, transform_indices = @transform_29, window_bounds = array<i64: 1, 32>}, {transform_indices = @transform_30, window_bounds = array<i64: 2, 8, 32>}]} {
    %c0 = arith.constant 0 : index
    %c0_0 = arith.constant 0 : index
    %c0_1 = arith.constant 0 : index
    %0 = vector.load %arg1[%c0, %c0_0, %c0_1] : memref<2x8x32xf32, #tpu.memory_space<vmem>>, vector<2x8x32xf32>
    %1 = vector.shape_cast %0 : vector<2x8x32xf32> to vector<16x32xf32>
    %c0_2 = arith.constant 0 : index
    %c0_3 = arith.constant 0 : index
    %2 = vector.load %arg2[%c0_2, %c0_3] : memref<1x32xf32, #tpu.memory_space<vmem>>, vector<1x32xf32>
    %c0_4 = arith.constant 0 : index
    %c0_5 = arith.constant 0 : index
    %3 = vector.load %arg3[%c0_4, %c0_5] : memref<1x32xf32, #tpu.memory_space<vmem>>, vector<1x32xf32>
    %cst = arith.constant dense<0.000000e+00> : vector<16xf32>
    %4 = vector.multi_reduction <add>, %1, %cst [1] : vector<16x32xf32> to vector<16xf32>
    %5 = vector.shape_cast %4 : vector<16xf32> to vector<16x1xf32>
    %cst_6 = arith.constant 3.200000e+01 : f32
    %6 = vector.broadcast %cst_6 : f32 to vector<16x1xf32>
    %7 = arith.divf %5, %6 : vector<16x1xf32>
    %8 = vector.broadcast %7 : vector<16x1xf32> to vector<16x32xf32>
    %9 = arith.subf %1, %8 : vector<16x32xf32>
    %10 = arith.mulf %9, %9 : vector<16x32xf32>
    %cst_7 = arith.constant dense<0.000000e+00> : vector<16xf32>
    %11 = vector.multi_reduction <add>, %10, %cst_7 [1] : vector<16x32xf32> to vector<16xf32>
    %12 = vector.shape_cast %11 : vector<16xf32> to vector<16x1xf32>
    %cst_8 = arith.constant 3.200000e+01 : f32
    %13 = vector.broadcast %cst_8 : f32 to vector<16x1xf32>
    %14 = arith.divf %12, %13 : vector<16x1xf32>
    %15 = vector.broadcast %7 : vector<16x1xf32> to vector<16x32xf32>
    %16 = arith.subf %1, %15 : vector<16x32xf32>
    %cst_9 = arith.constant 9.99999974E-6 : f32
    %17 = vector.broadcast %cst_9 : f32 to vector<16x1xf32>
    %18 = arith.addf %14, %17 : vector<16x1xf32>
    %19 = math.rsqrt %18 : vector<16x1xf32>
    %20 = vector.broadcast %19 : vector<16x1xf32> to vector<16x32xf32>
    %21 = arith.mulf %16, %20 : vector<16x32xf32>
    %22 = vector.broadcast %2 : vector<1x32xf32> to vector<16x32xf32>
    %23 = arith.mulf %21, %22 : vector<16x32xf32>
    %24 = vector.broadcast %3 : vector<1x32xf32> to vector<16x32xf32>
    %25 = arith.addf %23, %24 : vector<16x32xf32>
    %c0_10 = arith.constant 0 : index
    %c0_11 = arith.constant 0 : index
    %26 = vector.load %arg4[%c0_10, %c0_11] : memref<32x128xf32, #tpu.memory_space<vmem>>, vector<32x128xf32>
    %cst_12 = arith.constant dense<0.000000e+00> : vector<16x128xf32>
    %27 = tpu.matmul %25, %26, %cst_12 {dimension_numbers = #tpu.dot_dimension_numbers<[1], [0], [0], [1], [0, 0, 1, 1], [], []>} : vector<16x32xf32>, vector<32x128xf32>, vector<16x128xf32> -> vector<16x128xf32>
    %c0_13 = arith.constant 0 : index
    %c0_14 = arith.constant 0 : index
    %28 = vector.load %arg5[%c0_13, %c0_14] : memref<1x128xf32, #tpu.memory_space<vmem>>, vector<1x128xf32>
    %29 = vector.broadcast %28 : vector<1x128xf32> to vector<16x128xf32>
    %30 = arith.addf %27, %29 : vector<16x128xf32>
    %31 = arith.negf %30 : vector<16x128xf32>
    %32 = math.exp %31 : vector<16x128xf32>
    %cst_15 = arith.constant 1.000000e+00 : f32
    %33 = vector.broadcast %cst_15 : f32 to vector<16x128xf32>
    %34 = arith.addf %33, %32 : vector<16x128xf32>
    %35 = arith.divf %33, %34 : vector<16x128xf32>
    %36 = arith.mulf %30, %35 : vector<16x128xf32>
    %c0_16 = arith.constant 0 : index
    %c0_17 = arith.constant 0 : index
    %37 = vector.load %arg6[%c0_16, %c0_17] : memref<128x32xf32, #tpu.memory_space<vmem>>, vector<128x32xf32>
    %cst_18 = arith.constant dense<0.000000e+00> : vector<16x32xf32>
    %38 = tpu.matmul %36, %37, %cst_18 {dimension_numbers = #tpu.dot_dimension_numbers<[1], [0], [0], [1], [0, 0, 1, 1], [], []>} : vector<16x128xf32>, vector<128x32xf32>, vector<16x32xf32> -> vector<16x32xf32>
    %c0_19 = arith.constant 0 : index
    %c0_20 = arith.constant 0 : index
    %39 = vector.load %arg7[%c0_19, %c0_20] : memref<1x32xf32, #tpu.memory_space<vmem>>, vector<1x32xf32>
    %40 = vector.broadcast %39 : vector<1x32xf32> to vector<16x32xf32>
    %41 = arith.addf %38, %40 : vector<16x32xf32>
    %cst_21 = arith.constant 5.000000e-01 : f32
    %42 = vector.broadcast %cst_21 : f32 to vector<16x32xf32>
    %43 = arith.mulf %42, %41 : vector<16x32xf32>
    %44 = arith.addf %43, %1 : vector<16x32xf32>
    %c0_22 = arith.constant 0 : index
    %c0_23 = arith.constant 0 : index
    %45 = vector.load %arg8[%c0_22, %c0_23] : memref<1x32xf32, #tpu.memory_space<vmem>>, vector<1x32xf32>
    %c0_24 = arith.constant 0 : index
    %c0_25 = arith.constant 0 : index
    %46 = vector.load %arg9[%c0_24, %c0_25] : memref<1x32xf32, #tpu.memory_space<vmem>>, vector<1x32xf32>
    %cst_26 = arith.constant dense<0.000000e+00> : vector<16xf32>
    %47 = vector.multi_reduction <add>, %44, %cst_26 [1] : vector<16x32xf32> to vector<16xf32>
    %48 = vector.shape_cast %47 : vector<16xf32> to vector<16x1xf32>
    %cst_27 = arith.constant 3.200000e+01 : f32
    %49 = vector.broadcast %cst_27 : f32 to vector<16x1xf32>
    %50 = arith.divf %48, %49 : vector<16x1xf32>
    %51 = vector.broadcast %50 : vector<16x1xf32> to vector<16x32xf32>
    %52 = arith.subf %44, %51 : vector<16x32xf32>
    %53 = arith.mulf %52, %52 : vector<16x32xf32>
    %cst_28 = arith.constant dense<0.000000e+00> : vector<16xf32>
    %54 = vector.multi_reduction <add>, %53, %cst_28 [1] : vector<16x32xf32> to vector<16xf32>
    %55 = vector.shape_cast %54 : vector<16xf32> to vector<16x1xf32>
    %cst_29 = arith.constant 3.200000e+01 : f32
    %56 = vector.broadcast %cst_29 : f32 to vector<16x1xf32>
    %57 = arith.divf %55, %56 : vector<16x1xf32>
    %58 = vector.broadcast %50 : vector<16x1xf32> to vector<16x32xf32>
    %59 = arith.subf %44, %58 : vector<16x32xf32>
    %cst_30 = arith.constant 9.99999974E-6 : f32
    %60 = vector.broadcast %cst_30 : f32 to vector<16x1xf32>
    %61 = arith.addf %57, %60 : vector<16x1xf32>
    %62 = math.rsqrt %61 : vector<16x1xf32>
    %63 = vector.broadcast %62 : vector<16x1xf32> to vector<16x32xf32>
    %64 = arith.mulf %59, %63 : vector<16x32xf32>
    %65 = vector.broadcast %45 : vector<1x32xf32> to vector<16x32xf32>
    %66 = arith.mulf %64, %65 : vector<16x32xf32>
    %67 = vector.broadcast %46 : vector<1x32xf32> to vector<16x32xf32>
    %68 = arith.addf %66, %67 : vector<16x32xf32>
    %c0_31 = arith.constant 0 : index
    %c0_32 = arith.constant 0 : index
    %69 = vector.load %arg10[%c0_31, %c0_32] : memref<32x32xf32, #tpu.memory_space<vmem>>, vector<32x32xf32>
    %cst_33 = arith.constant dense<0.000000e+00> : vector<16x32xf32>
    %70 = tpu.matmul %68, %69, %cst_33 {dimension_numbers = #tpu.dot_dimension_numbers<[1], [0], [0], [1], [0, 0, 1, 1], [], []>} : vector<16x32xf32>, vector<32x32xf32>, vector<16x32xf32> -> vector<16x32xf32>
    %cst_34 = arith.constant 2.500000e-01 : f32
    %71 = vector.broadcast %cst_34 : f32 to vector<16x32xf32>
    %72 = arith.mulf %70, %71 : vector<16x32xf32>
    %c0_35 = arith.constant 0 : index
    %c0_36 = arith.constant 0 : index
    %73 = vector.load %arg11[%c0_35, %c0_36] : memref<32x64xf32, #tpu.memory_space<vmem>>, vector<32x64xf32>
    %cst_37 = arith.constant dense<0.000000e+00> : vector<16x64xf32>
    %74 = tpu.matmul %68, %73, %cst_37 {dimension_numbers = #tpu.dot_dimension_numbers<[1], [0], [0], [1], [0, 0, 1, 1], [], []>} : vector<16x32xf32>, vector<32x64xf32>, vector<16x64xf32> -> vector<16x64xf32>
    %75 = vector.shape_cast %72 : vector<16x32xf32> to vector<2x8x32xf32>
    %76 = vector.extract_strided_slice %74 {offsets = [0, 0], sizes = [16, 32], strides = [1, 1]} : vector<16x64xf32> to vector<16x32xf32>
    %77 = vector.shape_cast %76 : vector<16x32xf32> to vector<2x8x32xf32>
    %78 = vector.extract_strided_slice %74 {offsets = [0, 32], sizes = [16, 32], strides = [1, 1]} : vector<16x64xf32> to vector<16x32xf32>
    %79 = vector.shape_cast %78 : vector<16x32xf32> to vector<2x8x32xf32>
    %80 = vector.extract_strided_slice %75 {offsets = [0, 0, 0], sizes = [2, 8, 16], strides = [1, 1, 1]} : vector<2x8x32xf32> to vector<2x8x16xf32>
    %81 = vector.extract_strided_slice %77 {offsets = [0, 0, 0], sizes = [2, 8, 16], strides = [1, 1, 1]} : vector<2x8x32xf32> to vector<2x8x16xf32>
    %82 = vector.extract_strided_slice %79 {offsets = [0, 0, 0], sizes = [2, 8, 16], strides = [1, 1, 1]} : vector<2x8x32xf32> to vector<2x8x16xf32>
    "tpu.trace_start"() <{level = 10 : i32, message = "bqd,bkd->bqk"}> : () -> ()
    %cst_38 = arith.constant dense<0.000000e+00> : vector<2x8x8xf32>
    %83 = tpu.matmul %80, %81, %cst_38 {dimension_numbers = #tpu.dot_dimension_numbers<[2], [2], [1], [1], [0, 0, 0, 1, 1, 1], [0], [0]>} : vector<2x8x16xf32>, vector<2x8x16xf32>, vector<2x8x8xf32> -> vector<2x8x8xf32>
    "tpu.trace_stop"() : () -> ()
    %cst_39 = arith.constant dense<0xFF800000> : vector<2x8xf32>
    %84 = vector.multi_reduction <maximumf>, %83, %cst_39 [2] : vector<2x8x8xf32> to vector<2x8xf32>
    %85 = vector.shape_cast %84 : vector<2x8xf32> to vector<2x8x1xf32>
    %86 = vector.broadcast %85 : vector<2x8x1xf32> to vector<2x8x8xf32>
    %87 = arith.subf %83, %86 : vector<2x8x8xf32>
    %88 = math.exp %87 : vector<2x8x8xf32>
    %cst_40 = arith.constant dense<0.000000e+00> : vector<2x8xf32>
    %89 = vector.multi_reduction <add>, %88, %cst_40 [2] : vector<2x8x8xf32> to vector<2x8xf32>
    %90 = vector.shape_cast %89 : vector<2x8xf32> to vector<2x8x1xf32>
    %91 = vector.broadcast %90 : vector<2x8x1xf32> to vector<2x8x8xf32>
    %92 = arith.divf %88, %91 : vector<2x8x8xf32>
    "tpu.trace_start"() <{level = 10 : i32, message = "bqk,bkd->bqd"}> : () -> ()
    %cst_41 = arith.constant dense<0.000000e+00> : vector<2x8x16xf32>
    %93 = tpu.matmul %92, %82, %cst_41 {dimension_numbers = #tpu.dot_dimension_numbers<[2], [1], [1], [2], [0, 0, 0, 1, 1, 2], [0], [0]>} : vector<2x8x8xf32>, vector<2x8x16xf32>, vector<2x8x16xf32> -> vector<2x8x16xf32>
    "tpu.trace_stop"() : () -> ()
    %94 = vector.extract_strided_slice %75 {offsets = [0, 0, 16], sizes = [2, 8, 16], strides = [1, 1, 1]} : vector<2x8x32xf32> to vector<2x8x16xf32>
    %95 = vector.extract_strided_slice %77 {offsets = [0, 0, 16], sizes = [2, 8, 16], strides = [1, 1, 1]} : vector<2x8x32xf32> to vector<2x8x16xf32>
    %96 = vector.extract_strided_slice %79 {offsets = [0, 0, 16], sizes = [2, 8, 16], strides = [1, 1, 1]} : vector<2x8x32xf32> to vector<2x8x16xf32>
    "tpu.trace_start"() <{level = 10 : i32, message = "bqd,bkd->bqk"}> : () -> ()
    %cst_42 = arith.constant dense<0.000000e+00> : vector<2x8x8xf32>
    %97 = tpu.matmul %94, %95, %cst_42 {dimension_numbers = #tpu.dot_dimension_numbers<[2], [2], [1], [1], [0, 0, 0, 1, 1, 1], [0], [0]>} : vector<2x8x16xf32>, vector<2x8x16xf32>, vector<2x8x8xf32> -> vector<2x8x8xf32>
    "tpu.trace_stop"() : () -> ()
    %cst_43 = arith.constant dense<0xFF800000> : vector<2x8xf32>
    %98 = vector.multi_reduction <maximumf>, %97, %cst_43 [2] : vector<2x8x8xf32> to vector<2x8xf32>
    %99 = vector.shape_cast %98 : vector<2x8xf32> to vector<2x8x1xf32>
    %100 = vector.broadcast %99 : vector<2x8x1xf32> to vector<2x8x8xf32>
    %101 = arith.subf %97, %100 : vector<2x8x8xf32>
    %102 = math.exp %101 : vector<2x8x8xf32>
    %cst_44 = arith.constant dense<0.000000e+00> : vector<2x8xf32>
    %103 = vector.multi_reduction <add>, %102, %cst_44 [2] : vector<2x8x8xf32> to vector<2x8xf32>
    %104 = vector.shape_cast %103 : vector<2x8xf32> to vector<2x8x1xf32>
    %105 = vector.broadcast %104 : vector<2x8x1xf32> to vector<2x8x8xf32>
    %106 = arith.divf %102, %105 : vector<2x8x8xf32>
    "tpu.trace_start"() <{level = 10 : i32, message = "bqk,bkd->bqd"}> : () -> ()
    %cst_45 = arith.constant dense<0.000000e+00> : vector<2x8x16xf32>
    %107 = tpu.matmul %106, %96, %cst_45 {dimension_numbers = #tpu.dot_dimension_numbers<[2], [1], [1], [2], [0, 0, 0, 1, 1, 2], [0], [0]>} : vector<2x8x8xf32>, vector<2x8x16xf32>, vector<2x8x16xf32> -> vector<2x8x16xf32>
    "tpu.trace_stop"() : () -> ()
    %108 = tpu.concatenate %93, %107 in 2 : vector<2x8x16xf32>, vector<2x8x16xf32> -> vector<2x8x32xf32>
    %109 = vector.shape_cast %108 : vector<2x8x32xf32> to vector<16x32xf32>
    %c0_46 = arith.constant 0 : index
    %c0_47 = arith.constant 0 : index
    %110 = vector.load %arg12[%c0_46, %c0_47] : memref<32x32xf32, #tpu.memory_space<vmem>>, vector<32x32xf32>
    %cst_48 = arith.constant dense<0.000000e+00> : vector<16x32xf32>
    %111 = tpu.matmul %109, %110, %cst_48 {dimension_numbers = #tpu.dot_dimension_numbers<[1], [0], [0], [1], [0, 0, 1, 1], [], []>} : vector<16x32xf32>, vector<32x32xf32>, vector<16x32xf32> -> vector<16x32xf32>
    %c0_49 = arith.constant 0 : index
    %c0_50 = arith.constant 0 : index
    %112 = vector.load %arg13[%c0_49, %c0_50] : memref<1x32xf32, #tpu.memory_space<vmem>>, vector<1x32xf32>
    %113 = vector.broadcast %112 : vector<1x32xf32> to vector<16x32xf32>
    %114 = arith.addf %111, %113 : vector<16x32xf32>
    %115 = arith.addf %114, %44 : vector<16x32xf32>
    %c0_51 = arith.constant 0 : index
    %c0_52 = arith.constant 0 : index
    %116 = vector.load %arg14[%c0_51, %c0_52] : memref<1x32xf32, #tpu.memory_space<vmem>>, vector<1x32xf32>
    %c0_53 = arith.constant 0 : index
    %c0_54 = arith.constant 0 : index
    %117 = vector.load %arg15[%c0_53, %c0_54] : memref<1x32xf32, #tpu.memory_space<vmem>>, vector<1x32xf32>
    %cst_55 = arith.constant dense<0.000000e+00> : vector<16xf32>
    %118 = vector.multi_reduction <add>, %115, %cst_55 [1] : vector<16x32xf32> to vector<16xf32>
    %119 = vector.shape_cast %118 : vector<16xf32> to vector<16x1xf32>
    %cst_56 = arith.constant 3.200000e+01 : f32
    %120 = vector.broadcast %cst_56 : f32 to vector<16x1xf32>
    %121 = arith.divf %119, %120 : vector<16x1xf32>
    %122 = vector.broadcast %121 : vector<16x1xf32> to vector<16x32xf32>
    %123 = arith.subf %115, %122 : vector<16x32xf32>
    %124 = arith.mulf %123, %123 : vector<16x32xf32>
    %cst_57 = arith.constant dense<0.000000e+00> : vector<16xf32>
    %125 = vector.multi_reduction <add>, %124, %cst_57 [1] : vector<16x32xf32> to vector<16xf32>
    %126 = vector.shape_cast %125 : vector<16xf32> to vector<16x1xf32>
    %cst_58 = arith.constant 3.200000e+01 : f32
    %127 = vector.broadcast %cst_58 : f32 to vector<16x1xf32>
    %128 = arith.divf %126, %127 : vector<16x1xf32>
    %129 = vector.broadcast %121 : vector<16x1xf32> to vector<16x32xf32>
    %130 = arith.subf %115, %129 : vector<16x32xf32>
    %cst_59 = arith.constant 9.99999974E-6 : f32
    %131 = vector.broadcast %cst_59 : f32 to vector<16x1xf32>
    %132 = arith.addf %128, %131 : vector<16x1xf32>
    %133 = math.rsqrt %132 : vector<16x1xf32>
    %134 = vector.broadcast %133 : vector<16x1xf32> to vector<16x32xf32>
    %135 = arith.mulf %130, %134 : vector<16x32xf32>
    %136 = vector.broadcast %116 : vector<1x32xf32> to vector<16x32xf32>
    %137 = arith.mulf %135, %136 : vector<16x32xf32>
    %138 = vector.broadcast %117 : vector<1x32xf32> to vector<16x32xf32>
    %139 = arith.addf %137, %138 : vector<16x32xf32>
    %c0_60 = arith.constant 0 : index
    %c0_61 = arith.constant 0 : index
    %140 = vector.load %arg16[%c0_60, %c0_61] : memref<32x128xf32, #tpu.memory_space<vmem>>, vector<32x128xf32>
    %cst_62 = arith.constant dense<0.000000e+00> : vector<16x128xf32>
    %141 = tpu.matmul %139, %140, %cst_62 {dimension_numbers = #tpu.dot_dimension_numbers<[1], [0], [0], [1], [0, 0, 1, 1], [], []>} : vector<16x32xf32>, vector<32x128xf32>, vector<16x128xf32> -> vector<16x128xf32>
    %c0_63 = arith.constant 0 : index
    %c0_64 = arith.constant 0 : index
    %142 = vector.load %arg17[%c0_63, %c0_64] : memref<1x128xf32, #tpu.memory_space<vmem>>, vector<1x128xf32>
    %143 = vector.broadcast %142 : vector<1x128xf32> to vector<16x128xf32>
    %144 = arith.addf %141, %143 : vector<16x128xf32>
    %145 = vector.extract_strided_slice %144 {offsets = [0, 0], sizes = [16, 64], strides = [1, 1]} : vector<16x128xf32> to vector<16x64xf32>
    %146 = vector.extract_strided_slice %144 {offsets = [0, 64], sizes = [16, 64], strides = [1, 1]} : vector<16x128xf32> to vector<16x64xf32>
    %147 = arith.negf %146 : vector<16x64xf32>
    %148 = math.exp %147 : vector<16x64xf32>
    %cst_65 = arith.constant 1.000000e+00 : f32
    %149 = vector.broadcast %cst_65 : f32 to vector<16x64xf32>
    %150 = arith.addf %149, %148 : vector<16x64xf32>
    %151 = arith.divf %149, %150 : vector<16x64xf32>
    %152 = arith.mulf %145, %151 : vector<16x64xf32>
    %153 = vector.shape_cast %152 : vector<16x64xf32> to vector<2x8x64xf32>
    %c0_i32 = arith.constant 0 : i32
    %154 = arith.cmpi eq, %arg0, %c0_i32 : i32
    %155 = arith.extui %154 : i1 to i32
    %c0_i32_66 = arith.constant 0 : i32
    %156 = arith.cmpi ne, %155, %c0_i32_66 : i32
    scf.if %156 {
      %cst_123 = arith.constant 0.000000e+00 : f32
      %484 = vector.broadcast %cst_123 : f32 to vector<2x16x64xf32>
      %c0_124 = arith.constant 0 : index
      %c0_125 = arith.constant 0 : index
      %c0_126 = arith.constant 0 : index
      %485 = vector.load %arg32[%c0_124, %c0_125, %c0_126] : memref<2x40x64xf32, #tpu.memory_space<vmem>>, vector<2x16x64xf32>
      tpu.vector_store %arg32[%c0_124, %c0_125, %c0_126], %484 {strides = array<i32>} : memref<2x40x64xf32, #tpu.memory_space<vmem>>, vector<2x16x64xf32>,
      %cst_127 = arith.constant 0.000000e+00 : f32
      %486 = vector.broadcast %cst_127 : f32 to vector<2x16x64xf32>
      %c0_128 = arith.constant 0 : index
      %c24 = arith.constant 24 : index
      %c0_129 = arith.constant 0 : index
      %487 = vector.load %arg32[%c0_128, %c24, %c0_129] : memref<2x40x64xf32, #tpu.memory_space<vmem>>, vector<2x16x64xf32>
      tpu.vector_store %arg32[%c0_128, %c24, %c0_129], %486 {strides = array<i32>} : memref<2x40x64xf32, #tpu.memory_space<vmem>>, vector<2x16x64xf32>,
    } else {
    }
    %c0_67 = arith.constant 0 : index
    %c16 = arith.constant 16 : index
    %c0_68 = arith.constant 0 : index
    %157 = vector.load %arg32[%c0_67, %c16, %c0_68] : memref<2x40x64xf32, #tpu.memory_space<vmem>>, vector<2x8x64xf32>
    tpu.vector_store %arg32[%c0_67, %c16, %c0_68], %153 {strides = array<i32>} : memref<2x40x64xf32, #tpu.memory_space<vmem>>, vector<2x8x64xf32>,
    %c0_69 = arith.constant 0 : index
    %c0_70 = arith.constant 0 : index
    %c0_71 = arith.constant 0 : index
    %158 = vector.load %arg32[%c0_69, %c0_70, %c0_71] : memref<2x40x64xf32, #tpu.memory_space<vmem>>, vector<2x40x64xf32>
    %c0_72 = arith.constant 0 : index
    %c0_73 = arith.constant 0 : index
    %159 = vector.load %arg18[%c0_72, %c0_73] : memref<31x64xf32, #tpu.memory_space<vmem>>, vector<31x64xf32>
    %cst_74 = arith.constant 0.000000e+00 : f32
    %160 = vector.broadcast %cst_74 : f32 to vector<2x8x64xf32>
    %c39_i32 = arith.constant 39 : i32
    %161 = tpu.dynamic_rotate %158 by %c39_i32 dim 1 : vector<2x40x64xf32>, i32 -> vector<2x40x64xf32>
    %162 = vector.extract_strided_slice %161 {offsets = [0, 0, 0], sizes = [2, 8, 64], strides = [1, 1, 1]} : vector<2x40x64xf32> to vector<2x8x64xf32>
    %163 = vector.extract_strided_slice %159 {offsets = [0, 0], sizes = [1, 64], strides = [1, 1]} : vector<31x64xf32> to vector<1x64xf32>
    %164 = vector.shape_cast %163 : vector<1x64xf32> to vector<1x1x64xf32>
    %165 = vector.broadcast %164 : vector<1x1x64xf32> to vector<2x8x64xf32>
    %166 = arith.mulf %162, %165 : vector<2x8x64xf32>
    %167 = arith.addf %160, %166 : vector<2x8x64xf32>
    %c38_i32 = arith.constant 38 : i32
    %168 = tpu.dynamic_rotate %158 by %c38_i32 dim 1 : vector<2x40x64xf32>, i32 -> vector<2x40x64xf32>
    %169 = vector.extract_strided_slice %168 {offsets = [0, 0, 0], sizes = [2, 8, 64], strides = [1, 1, 1]} : vector<2x40x64xf32> to vector<2x8x64xf32>
    %170 = vector.extract_strided_slice %159 {offsets = [1, 0], sizes = [1, 64], strides = [1, 1]} : vector<31x64xf32> to vector<1x64xf32>
    %171 = vector.shape_cast %170 : vector<1x64xf32> to vector<1x1x64xf32>
    %172 = vector.broadcast %171 : vector<1x1x64xf32> to vector<2x8x64xf32>
    %173 = arith.mulf %169, %172 : vector<2x8x64xf32>
    %174 = arith.addf %167, %173 : vector<2x8x64xf32>
    %c37_i32 = arith.constant 37 : i32
    %175 = tpu.dynamic_rotate %158 by %c37_i32 dim 1 : vector<2x40x64xf32>, i32 -> vector<2x40x64xf32>
    %176 = vector.extract_strided_slice %175 {offsets = [0, 0, 0], sizes = [2, 8, 64], strides = [1, 1, 1]} : vector<2x40x64xf32> to vector<2x8x64xf32>
    %177 = vector.extract_strided_slice %159 {offsets = [2, 0], sizes = [1, 64], strides = [1, 1]} : vector<31x64xf32> to vector<1x64xf32>
    %178 = vector.shape_cast %177 : vector<1x64xf32> to vector<1x1x64xf32>
    %179 = vector.broadcast %178 : vector<1x1x64xf32> to vector<2x8x64xf32>
    %180 = arith.mulf %176, %179 : vector<2x8x64xf32>
    %181 = arith.addf %174, %180 : vector<2x8x64xf32>
    %c36_i32 = arith.constant 36 : i32
    %182 = tpu.dynamic_rotate %158 by %c36_i32 dim 1 : vector<2x40x64xf32>, i32 -> vector<2x40x64xf32>
    %183 = vector.extract_strided_slice %182 {offsets = [0, 0, 0], sizes = [2, 8, 64], strides = [1, 1, 1]} : vector<2x40x64xf32> to vector<2x8x64xf32>
    %184 = vector.extract_strided_slice %159 {offsets = [3, 0], sizes = [1, 64], strides = [1, 1]} : vector<31x64xf32> to vector<1x64xf32>
    %185 = vector.shape_cast %184 : vector<1x64xf32> to vector<1x1x64xf32>
    %186 = vector.broadcast %185 : vector<1x1x64xf32> to vector<2x8x64xf32>
    %187 = arith.mulf %183, %186 : vector<2x8x64xf32>
    %188 = arith.addf %181, %187 : vector<2x8x64xf32>
    %c35_i32 = arith.constant 35 : i32
    %189 = tpu.dynamic_rotate %158 by %c35_i32 dim 1 : vector<2x40x64xf32>, i32 -> vector<2x40x64xf32>
    %190 = vector.extract_strided_slice %189 {offsets = [0, 0, 0], sizes = [2, 8, 64], strides = [1, 1, 1]} : vector<2x40x64xf32> to vector<2x8x64xf32>
    %191 = vector.extract_strided_slice %159 {offsets = [4, 0], sizes = [1, 64], strides = [1, 1]} : vector<31x64xf32> to vector<1x64xf32>
    %192 = vector.shape_cast %191 : vector<1x64xf32> to vector<1x1x64xf32>
    %193 = vector.broadcast %192 : vector<1x1x64xf32> to vector<2x8x64xf32>
    %194 = arith.mulf %190, %193 : vector<2x8x64xf32>
    %195 = arith.addf %188, %194 : vector<2x8x64xf32>
    %c34_i32 = arith.constant 34 : i32
    %196 = tpu.dynamic_rotate %158 by %c34_i32 dim 1 : vector<2x40x64xf32>, i32 -> vector<2x40x64xf32>
    %197 = vector.extract_strided_slice %196 {offsets = [0, 0, 0], sizes = [2, 8, 64], strides = [1, 1, 1]} : vector<2x40x64xf32> to vector<2x8x64xf32>
    %198 = vector.extract_strided_slice %159 {offsets = [5, 0], sizes = [1, 64], strides = [1, 1]} : vector<31x64xf32> to vector<1x64xf32>
    %199 = vector.shape_cast %198 : vector<1x64xf32> to vector<1x1x64xf32>
    %200 = vector.broadcast %199 : vector<1x1x64xf32> to vector<2x8x64xf32>
    %201 = arith.mulf %197, %200 : vector<2x8x64xf32>
    %202 = arith.addf %195, %201 : vector<2x8x64xf32>
    %c33_i32 = arith.constant 33 : i32
    %203 = tpu.dynamic_rotate %158 by %c33_i32 dim 1 : vector<2x40x64xf32>, i32 -> vector<2x40x64xf32>
    %204 = vector.extract_strided_slice %203 {offsets = [0, 0, 0], sizes = [2, 8, 64], strides = [1, 1, 1]} : vector<2x40x64xf32> to vector<2x8x64xf32>
    %205 = vector.extract_strided_slice %159 {offsets = [6, 0], sizes = [1, 64], strides = [1, 1]} : vector<31x64xf32> to vector<1x64xf32>
    %206 = vector.shape_cast %205 : vector<1x64xf32> to vector<1x1x64xf32>
    %207 = vector.broadcast %206 : vector<1x1x64xf32> to vector<2x8x64xf32>
    %208 = arith.mulf %204, %207 : vector<2x8x64xf32>
    %209 = arith.addf %202, %208 : vector<2x8x64xf32>
    %c32_i32 = arith.constant 32 : i32
    %210 = tpu.dynamic_rotate %158 by %c32_i32 dim 1 : vector<2x40x64xf32>, i32 -> vector<2x40x64xf32>
    %211 = vector.extract_strided_slice %210 {offsets = [0, 0, 0], sizes = [2, 8, 64], strides = [1, 1, 1]} : vector<2x40x64xf32> to vector<2x8x64xf32>
    %212 = vector.extract_strided_slice %159 {offsets = [7, 0], sizes = [1, 64], strides = [1, 1]} : vector<31x64xf32> to vector<1x64xf32>
    %213 = vector.shape_cast %212 : vector<1x64xf32> to vector<1x1x64xf32>
    %214 = vector.broadcast %213 : vector<1x1x64xf32> to vector<2x8x64xf32>
    %215 = arith.mulf %211, %214 : vector<2x8x64xf32>
    %216 = arith.addf %209, %215 : vector<2x8x64xf32>
    %c31_i32 = arith.constant 31 : i32
    %217 = tpu.dynamic_rotate %158 by %c31_i32 dim 1 : vector<2x40x64xf32>, i32 -> vector<2x40x64xf32>
    %218 = vector.extract_strided_slice %217 {offsets = [0, 0, 0], sizes = [2, 8, 64], strides = [1, 1, 1]} : vector<2x40x64xf32> to vector<2x8x64xf32>
    %219 = vector.extract_strided_slice %159 {offsets = [8, 0], sizes = [1, 64], strides = [1, 1]} : vector<31x64xf32> to vector<1x64xf32>
    %220 = vector.shape_cast %219 : vector<1x64xf32> to vector<1x1x64xf32>
    %221 = vector.broadcast %220 : vector<1x1x64xf32> to vector<2x8x64xf32>
    %222 = arith.mulf %218, %221 : vector<2x8x64xf32>
    %223 = arith.addf %216, %222 : vector<2x8x64xf32>
    %c30_i32 = arith.constant 30 : i32
    %224 = tpu.dynamic_rotate %158 by %c30_i32 dim 1 : vector<2x40x64xf32>, i32 -> vector<2x40x64xf32>
    %225 = vector.extract_strided_slice %224 {offsets = [0, 0, 0], sizes = [2, 8, 64], strides = [1, 1, 1]} : vector<2x40x64xf32> to vector<2x8x64xf32>
    %226 = vector.extract_strided_slice %159 {offsets = [9, 0], sizes = [1, 64], strides = [1, 1]} : vector<31x64xf32> to vector<1x64xf32>
    %227 = vector.shape_cast %226 : vector<1x64xf32> to vector<1x1x64xf32>
    %228 = vector.broadcast %227 : vector<1x1x64xf32> to vector<2x8x64xf32>
    %229 = arith.mulf %225, %228 : vector<2x8x64xf32>
    %230 = arith.addf %223, %229 : vector<2x8x64xf32>
    %c29_i32 = arith.constant 29 : i32
    %231 = tpu.dynamic_rotate %158 by %c29_i32 dim 1 : vector<2x40x64xf32>, i32 -> vector<2x40x64xf32>
    %232 = vector.extract_strided_slice %231 {offsets = [0, 0, 0], sizes = [2, 8, 64], strides = [1, 1, 1]} : vector<2x40x64xf32> to vector<2x8x64xf32>
    %233 = vector.extract_strided_slice %159 {offsets = [10, 0], sizes = [1, 64], strides = [1, 1]} : vector<31x64xf32> to vector<1x64xf32>
    %234 = vector.shape_cast %233 : vector<1x64xf32> to vector<1x1x64xf32>
    %235 = vector.broadcast %234 : vector<1x1x64xf32> to vector<2x8x64xf32>
    %236 = arith.mulf %232, %235 : vector<2x8x64xf32>
    %237 = arith.addf %230, %236 : vector<2x8x64xf32>
    %c28_i32 = arith.constant 28 : i32
    %238 = tpu.dynamic_rotate %158 by %c28_i32 dim 1 : vector<2x40x64xf32>, i32 -> vector<2x40x64xf32>
    %239 = vector.extract_strided_slice %238 {offsets = [0, 0, 0], sizes = [2, 8, 64], strides = [1, 1, 1]} : vector<2x40x64xf32> to vector<2x8x64xf32>
    %240 = vector.extract_strided_slice %159 {offsets = [11, 0], sizes = [1, 64], strides = [1, 1]} : vector<31x64xf32> to vector<1x64xf32>
    %241 = vector.shape_cast %240 : vector<1x64xf32> to vector<1x1x64xf32>
    %242 = vector.broadcast %241 : vector<1x1x64xf32> to vector<2x8x64xf32>
    %243 = arith.mulf %239, %242 : vector<2x8x64xf32>
    %244 = arith.addf %237, %243 : vector<2x8x64xf32>
    %c27_i32 = arith.constant 27 : i32
    %245 = tpu.dynamic_rotate %158 by %c27_i32 dim 1 : vector<2x40x64xf32>, i32 -> vector<2x40x64xf32>
    %246 = vector.extract_strided_slice %245 {offsets = [0, 0, 0], sizes = [2, 8, 64], strides = [1, 1, 1]} : vector<2x40x64xf32> to vector<2x8x64xf32>
    %247 = vector.extract_strided_slice %159 {offsets = [12, 0], sizes = [1, 64], strides = [1, 1]} : vector<31x64xf32> to vector<1x64xf32>
    %248 = vector.shape_cast %247 : vector<1x64xf32> to vector<1x1x64xf32>
    %249 = vector.broadcast %248 : vector<1x1x64xf32> to vector<2x8x64xf32>
    %250 = arith.mulf %246, %249 : vector<2x8x64xf32>
    %251 = arith.addf %244, %250 : vector<2x8x64xf32>
    %c26_i32 = arith.constant 26 : i32
    %252 = tpu.dynamic_rotate %158 by %c26_i32 dim 1 : vector<2x40x64xf32>, i32 -> vector<2x40x64xf32>
    %253 = vector.extract_strided_slice %252 {offsets = [0, 0, 0], sizes = [2, 8, 64], strides = [1, 1, 1]} : vector<2x40x64xf32> to vector<2x8x64xf32>
    %254 = vector.extract_strided_slice %159 {offsets = [13, 0], sizes = [1, 64], strides = [1, 1]} : vector<31x64xf32> to vector<1x64xf32>
    %255 = vector.shape_cast %254 : vector<1x64xf32> to vector<1x1x64xf32>
    %256 = vector.broadcast %255 : vector<1x1x64xf32> to vector<2x8x64xf32>
    %257 = arith.mulf %253, %256 : vector<2x8x64xf32>
    %258 = arith.addf %251, %257 : vector<2x8x64xf32>
    %c25_i32 = arith.constant 25 : i32
    %259 = tpu.dynamic_rotate %158 by %c25_i32 dim 1 : vector<2x40x64xf32>, i32 -> vector<2x40x64xf32>
    %260 = vector.extract_strided_slice %259 {offsets = [0, 0, 0], sizes = [2, 8, 64], strides = [1, 1, 1]} : vector<2x40x64xf32> to vector<2x8x64xf32>
    %261 = vector.extract_strided_slice %159 {offsets = [14, 0], sizes = [1, 64], strides = [1, 1]} : vector<31x64xf32> to vector<1x64xf32>
    %262 = vector.shape_cast %261 : vector<1x64xf32> to vector<1x1x64xf32>
    %263 = vector.broadcast %262 : vector<1x1x64xf32> to vector<2x8x64xf32>
    %264 = arith.mulf %260, %263 : vector<2x8x64xf32>
    %265 = arith.addf %258, %264 : vector<2x8x64xf32>
    %c24_i32 = arith.constant 24 : i32
    %266 = tpu.dynamic_rotate %158 by %c24_i32 dim 1 : vector<2x40x64xf32>, i32 -> vector<2x40x64xf32>
    %267 = vector.extract_strided_slice %266 {offsets = [0, 0, 0], sizes = [2, 8, 64], strides = [1, 1, 1]} : vector<2x40x64xf32> to vector<2x8x64xf32>
    %268 = vector.extract_strided_slice %159 {offsets = [15, 0], sizes = [1, 64], strides = [1, 1]} : vector<31x64xf32> to vector<1x64xf32>
    %269 = vector.shape_cast %268 : vector<1x64xf32> to vector<1x1x64xf32>
    %270 = vector.broadcast %269 : vector<1x1x64xf32> to vector<2x8x64xf32>
    %271 = arith.mulf %267, %270 : vector<2x8x64xf32>
    %272 = arith.addf %265, %271 : vector<2x8x64xf32>
    %c23_i32 = arith.constant 23 : i32
    %273 = tpu.dynamic_rotate %158 by %c23_i32 dim 1 : vector<2x40x64xf32>, i32 -> vector<2x40x64xf32>
    %274 = vector.extract_strided_slice %273 {offsets = [0, 0, 0], sizes = [2, 8, 64], strides = [1, 1, 1]} : vector<2x40x64xf32> to vector<2x8x64xf32>
    %275 = vector.extract_strided_slice %159 {offsets = [16, 0], sizes = [1, 64], strides = [1, 1]} : vector<31x64xf32> to vector<1x64xf32>
    %276 = vector.shape_cast %275 : vector<1x64xf32> to vector<1x1x64xf32>
    %277 = vector.broadcast %276 : vector<1x1x64xf32> to vector<2x8x64xf32>
    %278 = arith.mulf %274, %277 : vector<2x8x64xf32>
    %279 = arith.addf %272, %278 : vector<2x8x64xf32>
    %c22_i32 = arith.constant 22 : i32
    %280 = tpu.dynamic_rotate %158 by %c22_i32 dim 1 : vector<2x40x64xf32>, i32 -> vector<2x40x64xf32>
    %281 = vector.extract_strided_slice %280 {offsets = [0, 0, 0], sizes = [2, 8, 64], strides = [1, 1, 1]} : vector<2x40x64xf32> to vector<2x8x64xf32>
    %282 = vector.extract_strided_slice %159 {offsets = [17, 0], sizes = [1, 64], strides = [1, 1]} : vector<31x64xf32> to vector<1x64xf32>
    %283 = vector.shape_cast %282 : vector<1x64xf32> to vector<1x1x64xf32>
    %284 = vector.broadcast %283 : vector<1x1x64xf32> to vector<2x8x64xf32>
    %285 = arith.mulf %281, %284 : vector<2x8x64xf32>
    %286 = arith.addf %279, %285 : vector<2x8x64xf32>
    %c21_i32 = arith.constant 21 : i32
    %287 = tpu.dynamic_rotate %158 by %c21_i32 dim 1 : vector<2x40x64xf32>, i32 -> vector<2x40x64xf32>
    %288 = vector.extract_strided_slice %287 {offsets = [0, 0, 0], sizes = [2, 8, 64], strides = [1, 1, 1]} : vector<2x40x64xf32> to vector<2x8x64xf32>
    %289 = vector.extract_strided_slice %159 {offsets = [18, 0], sizes = [1, 64], strides = [1, 1]} : vector<31x64xf32> to vector<1x64xf32>
    %290 = vector.shape_cast %289 : vector<1x64xf32> to vector<1x1x64xf32>
    %291 = vector.broadcast %290 : vector<1x1x64xf32> to vector<2x8x64xf32>
    %292 = arith.mulf %288, %291 : vector<2x8x64xf32>
    %293 = arith.addf %286, %292 : vector<2x8x64xf32>
    %c20_i32 = arith.constant 20 : i32
    %294 = tpu.dynamic_rotate %158 by %c20_i32 dim 1 : vector<2x40x64xf32>, i32 -> vector<2x40x64xf32>
    %295 = vector.extract_strided_slice %294 {offsets = [0, 0, 0], sizes = [2, 8, 64], strides = [1, 1, 1]} : vector<2x40x64xf32> to vector<2x8x64xf32>
    %296 = vector.extract_strided_slice %159 {offsets = [19, 0], sizes = [1, 64], strides = [1, 1]} : vector<31x64xf32> to vector<1x64xf32>
    %297 = vector.shape_cast %296 : vector<1x64xf32> to vector<1x1x64xf32>
    %298 = vector.broadcast %297 : vector<1x1x64xf32> to vector<2x8x64xf32>
    %299 = arith.mulf %295, %298 : vector<2x8x64xf32>
    %300 = arith.addf %293, %299 : vector<2x8x64xf32>
    %c19_i32 = arith.constant 19 : i32
    %301 = tpu.dynamic_rotate %158 by %c19_i32 dim 1 : vector<2x40x64xf32>, i32 -> vector<2x40x64xf32>
    %302 = vector.extract_strided_slice %301 {offsets = [0, 0, 0], sizes = [2, 8, 64], strides = [1, 1, 1]} : vector<2x40x64xf32> to vector<2x8x64xf32>
    %303 = vector.extract_strided_slice %159 {offsets = [20, 0], sizes = [1, 64], strides = [1, 1]} : vector<31x64xf32> to vector<1x64xf32>
    %304 = vector.shape_cast %303 : vector<1x64xf32> to vector<1x1x64xf32>
    %305 = vector.broadcast %304 : vector<1x1x64xf32> to vector<2x8x64xf32>
    %306 = arith.mulf %302, %305 : vector<2x8x64xf32>
    %307 = arith.addf %300, %306 : vector<2x8x64xf32>
    %c18_i32 = arith.constant 18 : i32
    %308 = tpu.dynamic_rotate %158 by %c18_i32 dim 1 : vector<2x40x64xf32>, i32 -> vector<2x40x64xf32>
    %309 = vector.extract_strided_slice %308 {offsets = [0, 0, 0], sizes = [2, 8, 64], strides = [1, 1, 1]} : vector<2x40x64xf32> to vector<2x8x64xf32>
    %310 = vector.extract_strided_slice %159 {offsets = [21, 0], sizes = [1, 64], strides = [1, 1]} : vector<31x64xf32> to vector<1x64xf32>
    %311 = vector.shape_cast %310 : vector<1x64xf32> to vector<1x1x64xf32>
    %312 = vector.broadcast %311 : vector<1x1x64xf32> to vector<2x8x64xf32>
    %313 = arith.mulf %309, %312 : vector<2x8x64xf32>
    %314 = arith.addf %307, %313 : vector<2x8x64xf32>
    %c17_i32 = arith.constant 17 : i32
    %315 = tpu.dynamic_rotate %158 by %c17_i32 dim 1 : vector<2x40x64xf32>, i32 -> vector<2x40x64xf32>
    %316 = vector.extract_strided_slice %315 {offsets = [0, 0, 0], sizes = [2, 8, 64], strides = [1, 1, 1]} : vector<2x40x64xf32> to vector<2x8x64xf32>
    %317 = vector.extract_strided_slice %159 {offsets = [22, 0], sizes = [1, 64], strides = [1, 1]} : vector<31x64xf32> to vector<1x64xf32>
    %318 = vector.shape_cast %317 : vector<1x64xf32> to vector<1x1x64xf32>
    %319 = vector.broadcast %318 : vector<1x1x64xf32> to vector<2x8x64xf32>
    %320 = arith.mulf %316, %319 : vector<2x8x64xf32>
    %321 = arith.addf %314, %320 : vector<2x8x64xf32>
    %c16_i32 = arith.constant 16 : i32
    %322 = tpu.dynamic_rotate %158 by %c16_i32 dim 1 : vector<2x40x64xf32>, i32 -> vector<2x40x64xf32>
    %323 = vector.extract_strided_slice %322 {offsets = [0, 0, 0], sizes = [2, 8, 64], strides = [1, 1, 1]} : vector<2x40x64xf32> to vector<2x8x64xf32>
    %324 = vector.extract_strided_slice %159 {offsets = [23, 0], sizes = [1, 64], strides = [1, 1]} : vector<31x64xf32> to vector<1x64xf32>
    %325 = vector.shape_cast %324 : vector<1x64xf32> to vector<1x1x64xf32>
    %326 = vector.broadcast %325 : vector<1x1x64xf32> to vector<2x8x64xf32>
    %327 = arith.mulf %323, %326 : vector<2x8x64xf32>
    %328 = arith.addf %321, %327 : vector<2x8x64xf32>
    %c15_i32 = arith.constant 15 : i32
    %329 = tpu.dynamic_rotate %158 by %c15_i32 dim 1 : vector<2x40x64xf32>, i32 -> vector<2x40x64xf32>
    %330 = vector.extract_strided_slice %329 {offsets = [0, 0, 0], sizes = [2, 8, 64], strides = [1, 1, 1]} : vector<2x40x64xf32> to vector<2x8x64xf32>
    %331 = vector.extract_strided_slice %159 {offsets = [24, 0], sizes = [1, 64], strides = [1, 1]} : vector<31x64xf32> to vector<1x64xf32>
    %332 = vector.shape_cast %331 : vector<1x64xf32> to vector<1x1x64xf32>
    %333 = vector.broadcast %332 : vector<1x1x64xf32> to vector<2x8x64xf32>
    %334 = arith.mulf %330, %333 : vector<2x8x64xf32>
    %335 = arith.addf %328, %334 : vector<2x8x64xf32>
    %c14_i32 = arith.constant 14 : i32
    %336 = tpu.dynamic_rotate %158 by %c14_i32 dim 1 : vector<2x40x64xf32>, i32 -> vector<2x40x64xf32>
    %337 = vector.extract_strided_slice %336 {offsets = [0, 0, 0], sizes = [2, 8, 64], strides = [1, 1, 1]} : vector<2x40x64xf32> to vector<2x8x64xf32>
    %338 = vector.extract_strided_slice %159 {offsets = [25, 0], sizes = [1, 64], strides = [1, 1]} : vector<31x64xf32> to vector<1x64xf32>
    %339 = vector.shape_cast %338 : vector<1x64xf32> to vector<1x1x64xf32>
    %340 = vector.broadcast %339 : vector<1x1x64xf32> to vector<2x8x64xf32>
    %341 = arith.mulf %337, %340 : vector<2x8x64xf32>
    %342 = arith.addf %335, %341 : vector<2x8x64xf32>
    %c13_i32 = arith.constant 13 : i32
    %343 = tpu.dynamic_rotate %158 by %c13_i32 dim 1 : vector<2x40x64xf32>, i32 -> vector<2x40x64xf32>
    %344 = vector.extract_strided_slice %343 {offsets = [0, 0, 0], sizes = [2, 8, 64], strides = [1, 1, 1]} : vector<2x40x64xf32> to vector<2x8x64xf32>
    %345 = vector.extract_strided_slice %159 {offsets = [26, 0], sizes = [1, 64], strides = [1, 1]} : vector<31x64xf32> to vector<1x64xf32>
    %346 = vector.shape_cast %345 : vector<1x64xf32> to vector<1x1x64xf32>
    %347 = vector.broadcast %346 : vector<1x1x64xf32> to vector<2x8x64xf32>
    %348 = arith.mulf %344, %347 : vector<2x8x64xf32>
    %349 = arith.addf %342, %348 : vector<2x8x64xf32>
    %c12_i32 = arith.constant 12 : i32
    %350 = tpu.dynamic_rotate %158 by %c12_i32 dim 1 : vector<2x40x64xf32>, i32 -> vector<2x40x64xf32>
    %351 = vector.extract_strided_slice %350 {offsets = [0, 0, 0], sizes = [2, 8, 64], strides = [1, 1, 1]} : vector<2x40x64xf32> to vector<2x8x64xf32>
    %352 = vector.extract_strided_slice %159 {offsets = [27, 0], sizes = [1, 64], strides = [1, 1]} : vector<31x64xf32> to vector<1x64xf32>
    %353 = vector.shape_cast %352 : vector<1x64xf32> to vector<1x1x64xf32>
    %354 = vector.broadcast %353 : vector<1x1x64xf32> to vector<2x8x64xf32>
    %355 = arith.mulf %351, %354 : vector<2x8x64xf32>
    %356 = arith.addf %349, %355 : vector<2x8x64xf32>
    %c11_i32 = arith.constant 11 : i32
    %357 = tpu.dynamic_rotate %158 by %c11_i32 dim 1 : vector<2x40x64xf32>, i32 -> vector<2x40x64xf32>
    %358 = vector.extract_strided_slice %357 {offsets = [0, 0, 0], sizes = [2, 8, 64], strides = [1, 1, 1]} : vector<2x40x64xf32> to vector<2x8x64xf32>
    %359 = vector.extract_strided_slice %159 {offsets = [28, 0], sizes = [1, 64], strides = [1, 1]} : vector<31x64xf32> to vector<1x64xf32>
    %360 = vector.shape_cast %359 : vector<1x64xf32> to vector<1x1x64xf32>
    %361 = vector.broadcast %360 : vector<1x1x64xf32> to vector<2x8x64xf32>
    %362 = arith.mulf %358, %361 : vector<2x8x64xf32>
    %363 = arith.addf %356, %362 : vector<2x8x64xf32>
    %c10_i32 = arith.constant 10 : i32
    %364 = tpu.dynamic_rotate %158 by %c10_i32 dim 1 : vector<2x40x64xf32>, i32 -> vector<2x40x64xf32>
    %365 = vector.extract_strided_slice %364 {offsets = [0, 0, 0], sizes = [2, 8, 64], strides = [1, 1, 1]} : vector<2x40x64xf32> to vector<2x8x64xf32>
    %366 = vector.extract_strided_slice %159 {offsets = [29, 0], sizes = [1, 64], strides = [1, 1]} : vector<31x64xf32> to vector<1x64xf32>
    %367 = vector.shape_cast %366 : vector<1x64xf32> to vector<1x1x64xf32>
    %368 = vector.broadcast %367 : vector<1x1x64xf32> to vector<2x8x64xf32>
    %369 = arith.mulf %365, %368 : vector<2x8x64xf32>
    %370 = arith.addf %363, %369 : vector<2x8x64xf32>
    %c9_i32 = arith.constant 9 : i32
    %371 = tpu.dynamic_rotate %158 by %c9_i32 dim 1 : vector<2x40x64xf32>, i32 -> vector<2x40x64xf32>
    %372 = vector.extract_strided_slice %371 {offsets = [0, 0, 0], sizes = [2, 8, 64], strides = [1, 1, 1]} : vector<2x40x64xf32> to vector<2x8x64xf32>
    %373 = vector.extract_strided_slice %159 {offsets = [30, 0], sizes = [1, 64], strides = [1, 1]} : vector<31x64xf32> to vector<1x64xf32>
    %374 = vector.shape_cast %373 : vector<1x64xf32> to vector<1x1x64xf32>
    %375 = vector.broadcast %374 : vector<1x1x64xf32> to vector<2x8x64xf32>
    %376 = arith.mulf %372, %375 : vector<2x8x64xf32>
    %377 = arith.addf %370, %376 : vector<2x8x64xf32>
    %378 = vector.shape_cast %377 : vector<2x8x64xf32> to vector<16x64xf32>
    %c0_75 = arith.constant 0 : index
    %c0_76 = arith.constant 0 : index
    %379 = vector.load %arg19[%c0_75, %c0_76] : memref<1x64xf32, #tpu.memory_space<vmem>>, vector<1x64xf32>
    %380 = vector.broadcast %379 : vector<1x64xf32> to vector<16x64xf32>
    %381 = arith.addf %378, %380 : vector<16x64xf32>
    %382 = arith.negf %381 : vector<16x64xf32>
    %383 = math.exp %382 : vector<16x64xf32>
    %cst_77 = arith.constant 1.000000e+00 : f32
    %384 = vector.broadcast %cst_77 : f32 to vector<16x64xf32>
    %385 = arith.addf %384, %383 : vector<16x64xf32>
    %386 = arith.divf %384, %385 : vector<16x64xf32>
    %387 = arith.mulf %381, %386 : vector<16x64xf32>
    %cst_78 = arith.constant dense<0.000000e+00> : vector<16xf32>
    %388 = vector.multi_reduction <add>, %387, %cst_78 [1] : vector<16x64xf32> to vector<16xf32>
    %389 = vector.shape_cast %388 : vector<16xf32> to vector<16x1xf32>
    %cst_79 = arith.constant 6.400000e+01 : f32
    %390 = vector.broadcast %cst_79 : f32 to vector<16x1xf32>
    %391 = arith.divf %389, %390 : vector<16x1xf32>
    %392 = vector.broadcast %391 : vector<16x1xf32> to vector<16x64xf32>
    %393 = arith.subf %387, %392 : vector<16x64xf32>
    %394 = arith.mulf %393, %393 : vector<16x64xf32>
    %cst_80 = arith.constant dense<0.000000e+00> : vector<16xf32>
    %395 = vector.multi_reduction <add>, %394, %cst_80 [1] : vector<16x64xf32> to vector<16xf32>
    %396 = vector.shape_cast %395 : vector<16xf32> to vector<16x1xf32>
    %cst_81 = arith.constant 6.400000e+01 : f32
    %397 = vector.broadcast %cst_81 : f32 to vector<16x1xf32>
    %398 = arith.divf %396, %397 : vector<16x1xf32>
    %399 = vector.broadcast %391 : vector<16x1xf32> to vector<16x64xf32>
    %400 = arith.subf %387, %399 : vector<16x64xf32>
    %cst_82 = arith.constant 9.99999997E-7 : f32
    %401 = vector.broadcast %cst_82 : f32 to vector<16x1xf32>
    %402 = arith.maximumf %398, %401 : vector<16x1xf32>
    %403 = math.rsqrt %402 : vector<16x1xf32>
    %404 = vector.broadcast %403 : vector<16x1xf32> to vector<16x64xf32>
    %405 = arith.mulf %400, %404 : vector<16x64xf32>
    %c0_83 = arith.constant 0 : index
    %c0_84 = arith.constant 0 : index
    %406 = vector.load %arg20[%c0_83, %c0_84] : memref<1x64xf32, #tpu.memory_space<vmem>>, vector<1x64xf32>
    %407 = vector.broadcast %406 : vector<1x64xf32> to vector<16x64xf32>
    %408 = arith.mulf %405, %407 : vector<16x64xf32>
    %c0_85 = arith.constant 0 : index
    %c0_86 = arith.constant 0 : index
    %409 = vector.load %arg21[%c0_85, %c0_86] : memref<64x32xf32, #tpu.memory_space<vmem>>, vector<64x32xf32>
    %cst_87 = arith.constant dense<0.000000e+00> : vector<16x32xf32>
    %410 = tpu.matmul %408, %409, %cst_87 {dimension_numbers = #tpu.dot_dimension_numbers<[1], [0], [0], [1], [0, 0, 1, 1], [], []>} : vector<16x64xf32>, vector<64x32xf32>, vector<16x32xf32> -> vector<16x32xf32>
    %c0_88 = arith.constant 0 : index
    %c0_89 = arith.constant 0 : index
    %411 = vector.load %arg22[%c0_88, %c0_89] : memref<1x32xf32, #tpu.memory_space<vmem>>, vector<1x32xf32>
    %412 = vector.broadcast %411 : vector<1x32xf32> to vector<16x32xf32>
    %413 = arith.addf %410, %412 : vector<16x32xf32>
    %414 = arith.addf %413, %115 : vector<16x32xf32>
    %c0_90 = arith.constant 0 : index
    %c0_91 = arith.constant 0 : index
    %415 = vector.load %arg23[%c0_90, %c0_91] : memref<1x32xf32, #tpu.memory_space<vmem>>, vector<1x32xf32>
    %c0_92 = arith.constant 0 : index
    %c0_93 = arith.constant 0 : index
    %416 = vector.load %arg24[%c0_92, %c0_93] : memref<1x32xf32, #tpu.memory_space<vmem>>, vector<1x32xf32>
    %cst_94 = arith.constant dense<0.000000e+00> : vector<16xf32>
    %417 = vector.multi_reduction <add>, %414, %cst_94 [1] : vector<16x32xf32> to vector<16xf32>
    %418 = vector.shape_cast %417 : vector<16xf32> to vector<16x1xf32>
    %cst_95 = arith.constant 3.200000e+01 : f32
    %419 = vector.broadcast %cst_95 : f32 to vector<16x1xf32>
    %420 = arith.divf %418, %419 : vector<16x1xf32>
    %421 = vector.broadcast %420 : vector<16x1xf32> to vector<16x32xf32>
    %422 = arith.subf %414, %421 : vector<16x32xf32>
    %423 = arith.mulf %422, %422 : vector<16x32xf32>
    %cst_96 = arith.constant dense<0.000000e+00> : vector<16xf32>
    %424 = vector.multi_reduction <add>, %423, %cst_96 [1] : vector<16x32xf32> to vector<16xf32>
    %425 = vector.shape_cast %424 : vector<16xf32> to vector<16x1xf32>
    %cst_97 = arith.constant 3.200000e+01 : f32
    %426 = vector.broadcast %cst_97 : f32 to vector<16x1xf32>
    %427 = arith.divf %425, %426 : vector<16x1xf32>
    %428 = vector.broadcast %420 : vector<16x1xf32> to vector<16x32xf32>
    %429 = arith.subf %414, %428 : vector<16x32xf32>
    %cst_98 = arith.constant 9.99999974E-6 : f32
    %430 = vector.broadcast %cst_98 : f32 to vector<16x1xf32>
    %431 = arith.addf %427, %430 : vector<16x1xf32>
    %432 = math.rsqrt %431 : vector<16x1xf32>
    %433 = vector.broadcast %432 : vector<16x1xf32> to vector<16x32xf32>
    %434 = arith.mulf %429, %433 : vector<16x32xf32>
    %435 = vector.broadcast %415 : vector<1x32xf32> to vector<16x32xf32>
    %436 = arith.mulf %434, %435 : vector<16x32xf32>
    %437 = vector.broadcast %416 : vector<1x32xf32> to vector<16x32xf32>
    %438 = arith.addf %436, %437 : vector<16x32xf32>
    %c0_99 = arith.constant 0 : index
    %c0_100 = arith.constant 0 : index
    %439 = vector.load %arg25[%c0_99, %c0_100] : memref<32x128xf32, #tpu.memory_space<vmem>>, vector<32x128xf32>
    %cst_101 = arith.constant dense<0.000000e+00> : vector<16x128xf32>
    %440 = tpu.matmul %438, %439, %cst_101 {dimension_numbers = #tpu.dot_dimension_numbers<[1], [0], [0], [1], [0, 0, 1, 1], [], []>} : vector<16x32xf32>, vector<32x128xf32>, vector<16x128xf32> -> vector<16x128xf32>
    %c0_102 = arith.constant 0 : index
    %c0_103 = arith.constant 0 : index
    %441 = vector.load %arg26[%c0_102, %c0_103] : memref<1x128xf32, #tpu.memory_space<vmem>>, vector<1x128xf32>
    %442 = vector.broadcast %441 : vector<1x128xf32> to vector<16x128xf32>
    %443 = arith.addf %440, %442 : vector<16x128xf32>
    %444 = arith.negf %443 : vector<16x128xf32>
    %445 = math.exp %444 : vector<16x128xf32>
    %cst_104 = arith.constant 1.000000e+00 : f32
    %446 = vector.broadcast %cst_104 : f32 to vector<16x128xf32>
    %447 = arith.addf %446, %445 : vector<16x128xf32>
    %448 = arith.divf %446, %447 : vector<16x128xf32>
    %449 = arith.mulf %443, %448 : vector<16x128xf32>
    %c0_105 = arith.constant 0 : index
    %c0_106 = arith.constant 0 : index
    %450 = vector.load %arg27[%c0_105, %c0_106] : memref<128x32xf32, #tpu.memory_space<vmem>>, vector<128x32xf32>
    %cst_107 = arith.constant dense<0.000000e+00> : vector<16x32xf32>
    %451 = tpu.matmul %449, %450, %cst_107 {dimension_numbers = #tpu.dot_dimension_numbers<[1], [0], [0], [1], [0, 0, 1, 1], [], []>} : vector<16x128xf32>, vector<128x32xf32>, vector<16x32xf32> -> vector<16x32xf32>
    %c0_108 = arith.constant 0 : index
    %c0_109 = arith.constant 0 : index
    %452 = vector.load %arg28[%c0_108, %c0_109] : memref<1x32xf32, #tpu.memory_space<vmem>>, vector<1x32xf32>
    %453 = vector.broadcast %452 : vector<1x32xf32> to vector<16x32xf32>
    %454 = arith.addf %451, %453 : vector<16x32xf32>
    %cst_110 = arith.constant 5.000000e-01 : f32
    %455 = vector.broadcast %cst_110 : f32 to vector<16x32xf32>
    %456 = arith.mulf %455, %454 : vector<16x32xf32>
    %457 = arith.addf %456, %414 : vector<16x32xf32>
    %c0_111 = arith.constant 0 : index
    %c0_112 = arith.constant 0 : index
    %458 = vector.load %arg29[%c0_111, %c0_112] : memref<1x32xf32, #tpu.memory_space<vmem>>, vector<1x32xf32>
    %c0_113 = arith.constant 0 : index
    %c0_114 = arith.constant 0 : index
    %459 = vector.load %arg30[%c0_113, %c0_114] : memref<1x32xf32, #tpu.memory_space<vmem>>, vector<1x32xf32>
    %cst_115 = arith.constant dense<0.000000e+00> : vector<16xf32>
    %460 = vector.multi_reduction <add>, %457, %cst_115 [1] : vector<16x32xf32> to vector<16xf32>
    %461 = vector.shape_cast %460 : vector<16xf32> to vector<16x1xf32>
    %cst_116 = arith.constant 3.200000e+01 : f32
    %462 = vector.broadcast %cst_116 : f32 to vector<16x1xf32>
    %463 = arith.divf %461, %462 : vector<16x1xf32>
    %464 = vector.broadcast %463 : vector<16x1xf32> to vector<16x32xf32>
    %465 = arith.subf %457, %464 : vector<16x32xf32>
    %466 = arith.mulf %465, %465 : vector<16x32xf32>
    %cst_117 = arith.constant dense<0.000000e+00> : vector<16xf32>
    %467 = vector.multi_reduction <add>, %466, %cst_117 [1] : vector<16x32xf32> to vector<16xf32>
    %468 = vector.shape_cast %467 : vector<16xf32> to vector<16x1xf32>
    %cst_118 = arith.constant 3.200000e+01 : f32
    %469 = vector.broadcast %cst_118 : f32 to vector<16x1xf32>
    %470 = arith.divf %468, %469 : vector<16x1xf32>
    %471 = vector.broadcast %463 : vector<16x1xf32> to vector<16x32xf32>
    %472 = arith.subf %457, %471 : vector<16x32xf32>
    %cst_119 = arith.constant 9.99999974E-6 : f32
    %473 = vector.broadcast %cst_119 : f32 to vector<16x1xf32>
    %474 = arith.addf %470, %473 : vector<16x1xf32>
    %475 = math.rsqrt %474 : vector<16x1xf32>
    %476 = vector.broadcast %475 : vector<16x1xf32> to vector<16x32xf32>
    %477 = arith.mulf %472, %476 : vector<16x32xf32>
    %478 = vector.broadcast %458 : vector<1x32xf32> to vector<16x32xf32>
    %479 = arith.mulf %477, %478 : vector<16x32xf32>
    %480 = vector.broadcast %459 : vector<1x32xf32> to vector<16x32xf32>
    %481 = arith.addf %479, %480 : vector<16x32xf32>
    %482 = vector.shape_cast %481 : vector<16x32xf32> to vector<2x8x32xf32>
    %c0_120 = arith.constant 0 : index
    %c0_121 = arith.constant 0 : index
    %c0_122 = arith.constant 0 : index
    %483 = vector.load %arg31[%c0_120, %c0_121, %c0_122] : memref<2x8x32xf32, #tpu.memory_space<vmem>>, vector<2x8x32xf32>
    tpu.vector_store %arg31[%c0_120, %c0_121, %c0_122], %482 {strides = array<i32>} : memref<2x8x32xf32, #tpu.memory_space<vmem>>, vector<2x8x32xf32>,
    return
  }
  func.func @transform_0(%arg0: i32) -> (i32, i32, i32) {
    %c0_i32 = arith.constant 0 : i32
    %c0_i32_0 = arith.constant 0 : i32
    %c0_i32_1 = arith.constant 0 : i32
    return %arg0, %c0_i32, %c0_i32_0 : i32, i32, i32
  }
  func.func @transform_1(%arg0: i32) -> (i32, i32) {
    %c0_i32 = arith.constant 0 : i32
    %c0_i32_0 = arith.constant 0 : i32
    %c0_i32_1 = arith.constant 0 : i32
    return %c0_i32, %c0_i32_0 : i32, i32
  }
  func.func @transform_2(%arg0: i32) -> (i32, i32) {
    %c0_i32 = arith.constant 0 : i32
    %c0_i32_0 = arith.constant 0 : i32
    %c0_i32_1 = arith.constant 0 : i32
    return %c0_i32, %c0_i32_0 : i32, i32
  }
  func.func @transform_3(%arg0: i32) -> (i32, i32) {
    %c0_i32 = arith.constant 0 : i32
    %c0_i32_0 = arith.constant 0 : i32
    %c0_i32_1 = arith.constant 0 : i32
    return %c0_i32, %c0_i32_0 : i32, i32
  }
  func.func @transform_4(%arg0: i32) -> (i32, i32) {
    %c0_i32 = arith.constant 0 : i32
    %c0_i32_0 = arith.constant 0 : i32
    %c0_i32_1 = arith.constant 0 : i32
    return %c0_i32, %c0_i32_0 : i32, i32
  }
  func.func @transform_5(%arg0: i32) -> (i32, i32) {
    %c0_i32 = arith.constant 0 : i32
    %c0_i32_0 = arith.constant 0 : i32
    %c0_i32_1 = arith.constant 0 : i32
    return %c0_i32, %c0_i32_0 : i32, i32
  }
  func.func @transform_6(%arg0: i32) -> (i32, i32) {
    %c0_i32 = arith.constant 0 : i32
    %c0_i32_0 = arith.constant 0 : i32
    %c0_i32_1 = arith.constant 0 : i32
    return %c0_i32, %c0_i32_0 : i32, i32
  }
  func.func @transform_7(%arg0: i32) -> (i32, i32) {
    %c0_i32 = arith.constant 0 : i32
    %c0_i32_0 = arith.constant 0 : i32
    %c0_i32_1 = arith.constant 0 : i32
    return %c0_i32, %c0_i32_0 : i32, i32
  }
  func.func @transform_8(%arg0: i32) -> (i32, i32) {
    %c0_i32 = arith.constant 0 : i32
    %c0_i32_0 = arith.constant 0 : i32
    %c0_i32_1 = arith.constant 0 : i32
    return %c0_i32, %c0_i32_0 : i32, i32
  }
  func.func @transform_9(%arg0: i32) -> (i32, i32) {
    %c0_i32 = arith.constant 0 : i32
    %c0_i32_0 = arith.constant 0 : i32
    %c0_i32_1 = arith.constant 0 : i32
    return %c0_i32, %c0_i32_0 : i32, i32
  }
  func.func @transform_10(%arg0: i32) -> (i32, i32) {
    %c0_i32 = arith.constant 0 : i32
    %c0_i32_0 = arith.constant 0 : i32
    %c0_i32_1 = arith.constant 0 : i32
    return %c0_i32, %c0_i32_0 : i32, i32
  }
  func.func @transform_11(%arg0: i32) -> (i32, i32) {
    %c0_i32 = arith.constant 0 : i32
    %c0_i32_0 = arith.constant 0 : i32
    %c0_i32_1 = arith.constant 0 : i32
    return %c0_i32, %c0_i32_0 : i32, i32
  }
  func.func @transform_12(%arg0: i32) -> (i32, i32) {
    %c0_i32 = arith.constant 0 : i32
    %c0_i32_0 = arith.constant 0 : i32
    %c0_i32_1 = arith.constant 0 : i32
    return %c0_i32, %c0_i32_0 : i32, i32
  }
  func.func @transform_13(%arg0: i32) -> (i32, i32) {
    %c0_i32 = arith.constant 0 : i32
    %c0_i32_0 = arith.constant 0 : i32
    %c0_i32_1 = arith.constant 0 : i32
    return %c0_i32, %c0_i32_0 : i32, i32
  }
  func.func @transform_14(%arg0: i32) -> (i32, i32) {
    %c0_i32 = arith.constant 0 : i32
    %c0_i32_0 = arith.constant 0 : i32
    %c0_i32_1 = arith.constant 0 : i32
    return %c0_i32, %c0_i32_0 : i32, i32
  }
  func.func @transform_15(%arg0: i32) -> (i32, i32) {
    %c0_i32 = arith.constant 0 : i32
    %c0_i32_0 = arith.constant 0 : i32
    %c0_i32_1 = arith.constant 0 : i32
    return %c0_i32, %c0_i32_0 : i32, i32
  }
  func.func @transform_16(%arg0: i32) -> (i32, i32) {
    %c0_i32 = arith.constant 0 : i32
    %c0_i32_0 = arith.constant 0 : i32
    %c0_i32_1 = arith.constant 0 : i32
    return %c0_i32, %c0_i32_0 : i32, i32
  }
  func.func @transform_17(%arg0: i32) -> (i32, i32) {
    %c0_i32 = arith.constant 0 : i32
    %c0_i32_0 = arith.constant 0 : i32
    %c0_i32_1 = arith.constant 0 : i32
    return %c0_i32, %c0_i32_0 : i32, i32
  }
  func.func @transform_18(%arg0: i32) -> (i32, i32) {
    %c0_i32 = arith.constant 0 : i32
    %c0_i32_0 = arith.constant 0 : i32
    %c0_i32_1 = arith.constant 0 : i32
    return %c0_i32, %c0_i32_0 : i32, i32
  }
  func.func @transform_19(%arg0: i32) -> (i32, i32) {
    %c0_i32 = arith.constant 0 : i32
    %c0_i32_0 = arith.constant 0 : i32
    %c0_i32_1 = arith.constant 0 : i32
    return %c0_i32, %c0_i32_0 : i32, i32
  }
  func.func @transform_20(%arg0: i32) -> (i32, i32) {
    %c0_i32 = arith.constant 0 : i32
    %c0_i32_0 = arith.constant 0 : i32
    %c0_i32_1 = arith.constant 0 : i32
    return %c0_i32, %c0_i32_0 : i32, i32
  }
  func.func @transform_21(%arg0: i32) -> (i32, i32) {
    %c0_i32 = arith.constant 0 : i32
    %c0_i32_0 = arith.constant 0 : i32
    %c0_i32_1 = arith.constant 0 : i32
    return %c0_i32, %c0_i32_0 : i32, i32
  }
  func.func @transform_22(%arg0: i32) -> (i32, i32) {
    %c0_i32 = arith.constant 0 : i32
    %c0_i32_0 = arith.constant 0 : i32
    %c0_i32_1 = arith.constant 0 : i32
    return %c0_i32, %c0_i32_0 : i32, i32
  }
  func.func @transform_23(%arg0: i32) -> (i32, i32) {
    %c0_i32 = arith.constant 0 : i32
    %c0_i32_0 = arith.constant 0 : i32
    %c0_i32_1 = arith.constant 0 : i32
    return %c0_i32, %c0_i32_0 : i32, i32
  }
  func.func @transform_24(%arg0: i32) -> (i32, i32) {
    %c0_i32 = arith.constant 0 : i32
    %c0_i32_0 = arith.constant 0 : i32
    %c0_i32_1 = arith.constant 0 : i32
    return %c0_i32, %c0_i32_0 : i32, i32
  }
  func.func @transform_25(%arg0: i32) -> (i32, i32) {
    %c0_i32 = arith.constant 0 : i32
    %c0_i32_0 = arith.constant 0 : i32
    %c0_i32_1 = arith.constant 0 : i32
    return %c0_i32, %c0_i32_0 : i32, i32
  }
  func.func @transform_26(%arg0: i32) -> (i32, i32) {
    %c0_i32 = arith.constant 0 : i32
    %c0_i32_0 = arith.constant 0 : i32
    %c0_i32_1 = arith.constant 0 : i32
    return %c0_i32, %c0_i32_0 : i32, i32
  }
  func.func @transform_27(%arg0: i32) -> (i32, i32) {
    %c0_i32 = arith.constant 0 : i32
    %c0_i32_0 = arith.constant 0 : i32
    %c0_i32_1 = arith.constant 0 : i32
    return %c0_i32, %c0_i32_0 : i32, i32
  }
  func.func @transform_28(%arg0: i32) -> (i32, i32) {
    %c0_i32 = arith.constant 0 : i32
    %c0_i32_0 = arith.constant 0 : i32
    %c0_i32_1 = arith.constant 0 : i32
    return %c0_i32, %c0_i32_0 : i32, i32
  }
  func.func @transform_29(%arg0: i32) -> (i32, i32) {
    %c0_i32 = arith.constant 0 : i32
    %c0_i32_0 = arith.constant 0 : i32
    %c0_i32_1 = arith.constant 0 : i32
    return %c0_i32, %c0_i32_0 : i32, i32
  }
  func.func @transform_30(%arg0: i32) -> (i32, i32, i32) {
    %c0_i32 = arith.constant 0 : i32
    %c0_i32_0 = arith.constant 0 : i32
    %c0_i32_1 = arith.constant 0 : i32
    return %arg0, %c0_i32, %c0_i32_0 : i32, i32, i32
  }
}

</mosaic_0001>

<bundles_post_ra>
// kernel: tpu_custom_call.1
= control target key start
LH: loop header
LB: loop body
LE: loop exit
PB: predicated region body
PF: predicated region fallthrough
CT: control target
= control target key end

     0   :  { %s3037_s6 = smov 1   ;;  %s3038_s10 = smov 2   ;;  %s4027_s0 = inlined_call_operand.smem [shape: u32[31], index: -1, kind: input, shape index: {}] }
   0x1   :  { %s3085_s5 = sld [smem:[%s4027_s0]]   ;;  %s3039_s14 = smov 3  }
   0x2   :  { %s3090_s9 = sld [smem:[%s4027_s0 + %s3037_s6]]   ;;  %s3040_s18 = smov 4  }
   0x3   :  { %s3095_s13 = sld [smem:[%s4027_s0 + %s3038_s10]]   ;;  %s3041_s22 = smov 5  }
   0x4   :  { %s3100_s17 = sld [smem:[%s4027_s0 + %s3039_s14]]   ;;  %s3042_s26 = smov 6  }
   0x5   :  { %s3105_s21 = sld [smem:[%s4027_s0 + %s3040_s18]]   ;;  %s3043_s30 = smov 7  }
   0x6   :  { %s3110_s25 = sld [smem:[%s4027_s0 + %s3041_s22]]   ;;  %s3044_s4 = smov 8  }
   0x7   :  { %s3115_s29 = sld [smem:[%s4027_s0 + %s3042_s26]]   ;;  %s3045_s10 = smov 9  }
   0x8   :  { %s3120_s3 = sld [smem:[%s4027_s0 + %s3043_s30]]   ;;  %s3046_s15 = smov 10  }
   0x9   :  { %s3125_s8 = sld [smem:[%s4027_s0 + %s3044_s4]]   ;;  %s3047_s20 = smov 11  }
   0xa   :  { %s3130_s14 = sld [smem:[%s4027_s0 + %s3045_s10]]   ;;  %s3048_s26 = smov 12  }
   0xb   :  { %s3135_s19 = sld [smem:[%s4027_s0 + %s3046_s15]]   ;;  %s3049_s1 = smov 13  }
   0xc   :  { %s3140_s24 = sld [smem:[%s4027_s0 + %s3047_s20]]   ;;  %s3050_s7 = smov 14  }
   0xd   :  { %s3145_s30 = sld [smem:[%s4027_s0 + %s3048_s26]]   ;;  %s3051_s15 = smov 15  }
   0xe   :  { %s3150_s6 = sld [smem:[%s4027_s0 + %s3049_s1]]   ;;  %s3052_s22 = smov 16  }
   0xf   :  { %s3155_s12 = sld [smem:[%s4027_s0 + %s3050_s7]]   ;;  %s3053_s28 = smov 17  }
  0x10   :  { %s3160_s20 = sld [smem:[%s4027_s0 + %s3051_s15]]   ;;  %s3054_s7 = smov 18  }
  0x11   :  { %s3165_s27 = sld [smem:[%s4027_s0 + %s3052_s22]]   ;;  %s3055_s15 = smov 19  }
  0x12   :  { %s3170_s4 = sld [smem:[%s4027_s0 + %s3053_s28]]   ;;  %s3056_s22 = smov 20  }
  0x13   :  { %s3057_s28 = smov 21  }
  0x14   :  { %4037 = sst [smem:[#allocation6_spill]] %s3150_s6 }
  0x15   :  { %4038 = sst [smem:[#allocation7_spill]] %s3155_s12 }
  0x16   :  { %s3175_s12 = sld [smem:[%s4027_s0 + %s3054_s7]]   ;;  %s3058_s7 = smov 22  }
  0x17   :  { %4039 = sst [smem:[#allocation8_spill]] %s3165_s27 }
  0x18   :  { %4040 = sst [smem:[#allocation9_spill]] %s3170_s4 }
  0x19   :  { %s3180_s6 = sld [smem:[%s4027_s0 + %s3055_s15]]   ;;  %s3059_s15 = smov 23  }
  0x1a   :  { %s3185_s27 = sld [smem:[%s4027_s0 + %s3056_s22]]   ;;  %s3060_s22 = smov 24  }
  0x1b   :  { %s3190_s4 = sld [smem:[%s4027_s0 + %s3057_s28]]   ;;  %s3061_s28 = smov 25  }
  0x1c   :  { %4041 = sst [smem:[#allocation10_spill]] %s3175_s12 }
  0x1d   :  { %s3195_s12 = sld [smem:[%s4027_s0 + %s3058_s7]]   ;;  %s3062_s7 = smov 26  }
  0x1f   :  { %4042 = sst [smem:[#allocation11_spill]] %s3180_s6 }
  0x20   :  { %4043 = sst [smem:[#allocation12_spill]] %s3185_s27 }
  0x21   :  { %4044 = sst [smem:[#allocation13_spill]] %s3190_s4 }
  0x22   :  { %s3200_s6 = sld [smem:[%s4027_s0 + %s3059_s15]]   ;;  %s3063_s15 = smov 27  }
  0x23   :  { %4045 = sst [smem:[#allocation14_spill]] %s3195_s12 }
  0x24   :  { %s3205_s27 = sld [smem:[%s4027_s0 + %s3060_s22]]   ;;  %s3064_s22 = smov 28  }
  0x25   :  { %s3210_s4 = sld [smem:[%s4027_s0 + %s3061_s28]]   ;;  %s3065_s28 = smov 29  }
  0x26   :  { %s3215_s12 = sld [smem:[%s4027_s0 + %s3062_s7]]   ;;  %s3066_s7 = smov 30  }
  0x28   :  { %4046 = sst [smem:[#allocation15_spill]] %s3200_s6 }
  0x29   :  { %s3220_s6 = sld [smem:[%s4027_s0 + %s3063_s15]]  }
  0x2a   :  { %4047 = sst [smem:[#allocation16_spill]] %s3205_s27 }
  0x2b   :  { %4048 = sst [smem:[#allocation17_spill]] %s3210_s4 }
  0x2c   :  { %4049 = sst [smem:[#allocation18_spill]] %s3215_s12 }
  0x2d   :  { %s3225_s27 = sld [smem:[%s4027_s0 + %s3064_s22]]  }
  0x2e   :  { %s3230_s4 = sld [smem:[%s4027_s0 + %s3065_s28]]  }
  0x2f   :  { %s3235_s12 = sld [smem:[%s4027_s0 + %s3066_s7]]  }
  0x30   :  { %v3238_v0 = vld [vmem:[%s3085_s5] sm:$0xff]  ;;  %vm131_vm0 = vcmask 261120   ;;  %v3241_v1 = vld [vmem:[%s3085_s5 + $0x8] sm:$0xff] }
  0x31   :  { %66 = vsyncpa [#allocation4], 0  ;;  %v132_v2 = vsel %vm131_vm0, %v3238_v0, 0.0  ;;  %v135_v3 = vsel %vm131_vm0, %v3241_v1, 0.0  ;;  %v175_v14 = vld [vmem:[%s3100_s17] sm:$0xff]  ;;  %v176_v15 = vld [vmem:[%s3100_s17 + $0x8] sm:$0xff] }
  0x32   :  { %133 = vadd.xlane.f32.xlu0 %v132_v2  ;;  %v177_v16 = vld [vmem:[%s3100_s17 + $0x10] sm:$0xff]  ;;  %v2773_v17 = vpack.c.bf16 %v176_v15, %v175_v14  ;;  %v178_v18 = vld [vmem:[%s3100_s17 + $0x18] sm:$0xff]  ;;  %v2427_v27 = vld [vmem:[%s3090_s9] ss:$0 sm:$0xff]  ;;  %vm3068_vm1 = vmmov 0   ;;  %vm593_vm2 = vcmask 130048  }
  0x33   :  { %v2777_v19 = vpack.c.bf16 %v178_v18, %v177_v16  ;;  %v2428_v29 = vld [vmem:[%s3095_s13] ss:$0 sm:$0xff]  ;;  %v282_v37 = vld [vmem:[%s3110_s25 + $0x8] sm:$0xff]  ;;  %v283_v39 = vld [vmem:[%s3110_s25 + $0x10] sm:$0xff]  ;;  %vm746_vm3 = vcmask 64512   ;;  %s3069_s0 = smov 96  }
  0x34   :  { %2774 = vmatprep.subr.bf16.mxu0 %v2773_v17  ;;  %v281_v36 = vld [vmem:[%s3110_s25] sm:$0xff]  ;;  %v284_v40 = vld [vmem:[%s3110_s25 + $0x18] sm:$0xff]  ;;  %v286_v43 = vld [vmem:[%s3110_s25 + $0x28] sm:$0xff]  ;;  %s3070_s5 = smov 112   ;;  %s3071_s9 = smov 80   ;;  %vm1517_vm4 = vcmask 523264  }
  0x35   :  { %2776 = vmatpush3.bf16.msra.mxu0 %v2773_v17  ;;  %v2781_v38 = vpack.c.bf16 %v282_v37, %v281_v36  ;;  %v2785_v41 = vpack.c.bf16 %v284_v40, %v283_v39  ;;  %v285_v42 = vld [vmem:[%s3110_s25 + $0x20] sm:$0xff]  ;;  %v287_v45 = vld [vmem:[%s3110_s25 + $0x30] sm:$0xff]  ;;  %v288_v46 = vld [vmem:[%s3110_s25 + $0x38] sm:$0xff]  ;;  %s3072_s13 = smov 16   ;;  %s4050_s17 = sld [smem:[#allocation6_spill]] }
  0x36   :  { %136 = vadd.xlane.f32.xlu0 %v135_v3  ;;  %2778 = vmatprep.subr.bf16.mxu0 %v2777_v19  ;;  %v2789_v44 = vpack.c.bf16 %v286_v43, %v285_v42  ;;  %v2793_v47 = vpack.c.bf16 %v288_v46, %v287_v45  ;;  %v289_v48 = vld [vmem:[%s3110_s25 + $0x40] sm:$0xff]  ;;  %v290_v49 = vld [vmem:[%s3110_s25 + $0x48] sm:$0xff]  ;;  %v291_v51 = vld [vmem:[%s3110_s25 + $0x50] sm:$0xff]  ;;  %s4069_s15 = sld [smem:[#allocation15_spill]]  ;;  %s4070_s16 = sld [smem:[#allocation18_spill]] }
  0x37   :  { %2782 = vmatprep.subr.bf16.mxu1 %v2781_v38  ;;  %v2797_v50 = vpack.c.bf16 %v290_v49, %v289_v48  ;;  %v292_v52 = vld [vmem:[%s3110_s25 + $0x58] sm:$0xff]  ;;  %v293_v54 = vld [vmem:[%s3110_s25 + $0x60] sm:$0xff]  ;;  %v294_v55 = vld [vmem:[%s3110_s25 + $0x68] sm:$0xff]  ;;  %s4071_s18 = sld [smem:[#allocation17_spill]] }
  0x38   :  { %2784 = vmatpush3.bf16.msra.mxu1 %v2781_v38  ;;  %v2801_v53 = vpack.c.bf16 %v292_v52, %v291_v51  ;;  %v2805_v56 = vpack.c.bf16 %v294_v55, %v293_v54  ;;  %v295_v57 = vld [vmem:[%s3110_s25 + $0x70] sm:$0xff]  ;;  %v296_v58 = vld [vmem:[%s3110_s25 + $0x78] sm:$0xff]  ;;  %v2429_v60 = vld [vmem:[%s3105_s21] ss:$0 sm:$0xff]  ;;  %s4051_s21 = sld [smem:[#allocation7_spill]]  ;;  %s4052_s25 = sld [smem:[#allocation8_spill]] }
  0x39   :  { %2780 = vmatpush3.bf16.msra.mxu0 %v2777_v19  ;;  %2786 = vmatprep.subr.bf16.mxu1 %v2785_v41  ;;  %v2809_v59 = vpack.c.bf16 %v296_v58, %v295_v57  ;;  %v430_v36 = vld [vmem:[%s3130_s14 + $0x18] sm:$0xff]  ;;  %v514_v38 = vld [vmem:[%s3135_s19] sm:$0xff]  ;;  %v515_v39 = vld [vmem:[%s3135_s19 + $0x8] sm:$0xff] }
  0x3a   :  { %v2821_v40 = vpack.c.bf16 %v515_v39, %v514_v38  ;;  %v2435_v48 = vld [vmem:[%s3120_s3] ss:$0 sm:$0xff]  ;;  %v516_v55 = vld [vmem:[%s3135_s19 + $0x10] sm:$0xff]  ;;  %s3073_s3 = smov 64  }
  0x3b   :  { %v2436_v52 = vld [vmem:[%s3125_s8] ss:$0 sm:$0xff]  ;;  %s4063_s8 = sld [smem:[#allocation10_spill]] }
  0x3c   :  { %2788 = vmatpush3.bf16.msra.mxu1 %v2785_v41 }
  0x3d   :  { %2790 = vmatprep.subr.bf16.mxu1 %v2789_v44 }
  0x40   :  { %2792 = vmatpush3.bf16.msra.mxu1 %v2789_v44 }
  0x41   :  { %2794 = vmatprep.subr.bf16.mxu1 %v2793_v47 }
  0x44   :  { %2796 = vmatpush3.bf16.msra.mxu1 %v2793_v47 }
  0x45   :  { %2798 = vmatprep.subr.bf16.mxu1 %v2797_v50 }
  0x48   :  { %2800 = vmatpush3.bf16.msra.mxu1 %v2797_v50 }
  0x49   :  { %2802 = vmatprep.subr.bf16.mxu1 %v2801_v53 }
  0x4c   :  { %2804 = vmatpush3.bf16.msra.mxu1 %v2801_v53 }
  0x4d   :  { %2806 = vmatprep.subr.bf16.mxu1 %v2805_v56 }
  0x50   :  { %2808 = vmatpush3.bf16.msra.mxu1 %v2805_v56  ;;  %v517_v56 = vld [vmem:[%s3135_s19 + $0x18] sm:$0xff]  ;;  %s4065_s19 = sld [smem:[#allocation11_spill]] }
  0x51   :  { %2810 = vmatprep.subr.bf16.mxu1 %v2809_v59 }
  0x54   :  { %2812 = vmatpush3.bf16.msra.mxu1 %v2809_v59  ;;  %v2825_v59 = vpack.c.bf16 %v517_v56, %v516_v55 }
  0xbf   :  { %v134_v4 = vpop.xlane.xlu0 %133 }
  0xc0   :  { %v139_v5 = vmul.f32 0.03125, %v134_v4 }
  0xc2   :  { %v141_v6 = vsub.f32 %v3238_v0, %v139_v5 }
  0xc3   :  { %v137_v7 = vpop.xlane.xlu0 %136 }
  0xc4   :  { %v140_v8 = vmul.f32 0.03125, %v137_v7  ;;  %v143_v9 = vmul.f32 %v141_v6, %v141_v6 }
  0xc6   :  { %v142_v10 = vsub.f32 %v3241_v1, %v140_v8  ;;  %v145_v11 = vsel %vm131_vm0, %v143_v9, 0.0 }
  0xc7   :  { %146 = vadd.xlane.f32.xlu1 %v145_v11 }
  0xc8   :  { %v144_v12 = vmul.f32 %v142_v10, %v142_v10 }
  0xca   :  { %v148_v13 = vsel %vm131_vm0, %v144_v12, 0.0 }
  0xcb   :  { %149 = vadd.xlane.f32.xlu1 %v148_v13  ;;  %v2434_v13 = vld [vmem:[%s3115_s29] ss:$0 sm:$0xff]  ;;  %s4053_s29 = sld [smem:[#allocation9_spill]] }
 0x154   :  { %v147_v20 = vpop.xlane.xlu1 %146 }
 0x155   :  { %v151_v21 = vmul.f32 0.03125, %v147_v20 }
 0x157   :  { %v153_v22 = vadd.f32 1e-05, %v151_v21 }
 0x158   :  { %v150_v23 = vpop.xlane.xlu1 %149 }
 0x159   :  { %2941 = vrsqrt.f32 %v153_v22  ;;  %v152_v24 = vmul.f32 0.03125, %v150_v23 }
 0x15b   :  { %v154_v25 = vadd.f32 1e-05, %v152_v24 }
 0x15d   :  { %2943 = vrsqrt.f32 %v154_v25 }
 0x163   :  { %v2942_v26 = vpop.eup %2941 }
 0x164   :  { %v157_v28 = vmul.f32 %v2942_v26, %v141_v6 }
 0x166   :  { %v165_v30 = vmul.f32 %v2427_v27, %v157_v28 }
 0x167   :  { %v2944_v31 = vpop.eup %2943 }
 0x168   :  { %v158_v32 = vmul.f32 %v2944_v31, %v142_v10  ;;  %v173_v33 = vadd.f32 %v2428_v29, %v165_v30 }
 0x16a   :  { %v166_v34 = vmul.f32 %v2427_v27, %v158_v32  ;;  %2586 = vmatprep.mubr.msk.f32.mxu0 %vm131_vm0, %v173_v33  ;;  %v427_v32 = vld [vmem:[%s3130_s14] sm:$0xff]  ;;  %v428_v33 = vld [vmem:[%s3130_s14 + $0x8] sm:$0xff] }
 0x16c   :  { %v174_v35 = vadd.f32 %v2428_v29, %v166_v34  ;;  %v2813_v34 = vpack.c.bf16 %v428_v33, %v427_v32 }
 0x16e   :  { %2587 = vmatmul.mubr.msk.f32.vlgmr.msra.gmra.mrb[0].mxu0 %vm131_vm0, %v174_v35  ;;  %2814 = vmatprep.subr.bf16.mxu0 %v2813_v34  ;;  %v429_v35 = vld [vmem:[%s3130_s14 + $0x10] sm:$0xff]  ;;  %s4064_s14 = sld [smem:[#allocation12_spill]] }
 0x16f   :  { %2816 = vmatpush3.bf16.msra.mxu0 %v2813_v34  ;;  %v2817_v37 = vpack.c.bf16 %v430_v36, %v429_v35 }
 0x171   :  { %2818 = vmatprep.subr.bf16.mxu0 %v2817_v37 }
 0x173   :  { %2820 = vmatpush3.bf16.msra.mxu0 %v2817_v37 }
 0x174   :  { %2822 = vmatprep.subr.bf16.mxu0 %v2821_v40 }
 0x241   :  { %v2588_v61 = vpop.f32.mrb[0].mxu0 }
 0x242   :  { %v264_v62 = vadd.f32 %v2588_v61, %v2429_v60  ;;  %v258_v63 = vpop.f32.mrb[1].mxu0 }
 0x243   :  { %v259_v2 = vadd.f32 %v2429_v60, %v258_v63  ;;  %v3067_v60 = vmov 0.0  }
 0x244   :  { %v2433_v3 = vmul.f32 -1.442695, %v264_v62  ;;  %2671 = vmatprep.subr.mxu1 %v3067_v60  ;;  %1518 = vst.msk [vmem:[#allocation2] sm:$0xff] %vm1517_vm4, %v3067_v60  ;;  %1519 = vst.msk [vmem:[#allocation2 + $0x8] sm:$0xff] %vm1517_vm4, %v3067_v60 }
 0x245   :  { %v2432_v4 = vmul.f32 -1.442695, %v259_v2  ;;  %1520 = vst.msk [vmem:[#allocation2 + $0x28] sm:$0xff] %vm1517_vm4, %v3067_v60  ;;  %1521 = vst.msk [vmem:[#allocation2 + $0x30] sm:$0xff] %vm1517_vm4, %v3067_v60 }
 0x246   :  { %2945 = vpow2.f32 %v2433_v3  ;;  %1522 = vst.msk [vmem:[#allocation2 + $0x18] sm:$0xff] %vm1517_vm4, %v3067_v60  ;;  %1523 = vst.msk [vmem:[#allocation2 + $0x20] sm:$0xff] %vm1517_vm4, %v3067_v60 }
 0x247   :  { %2947 = vpow2.f32 %v2432_v4  ;;  %1524 = vst.msk [vmem:[#allocation2 + $0x40] sm:$0xff] %vm1517_vm4, %v3067_v60  ;;  %1525 = vst.msk [vmem:[#allocation2 + $0x48] sm:$0xff] %vm1517_vm4, %v3067_v60 }
 0x250   :  { %v2946_v5 = vpop.eup %2945 }
 0x251   :  { %v2948_v6 = vpop.eup %2947  ;;  %v274_v7 = vadd.f32 1.0, %v2946_v5 }
 0x252   :  { %v273_v8 = vadd.f32 1.0, %v2948_v6 }
 0x253   :  { %2949 = vrcp.f32 %v274_v7 }
 0x254   :  { %2951 = vrcp.f32 %v273_v8 }
 0x25d   :  { %v2950_v9 = vpop.eup %2949 }
 0x25e   :  { %v2952_v10 = vpop.eup %2951  ;;  %v280_v12 = vmul.f32 %v2950_v9, %v264_v62 }
 0x25f   :  { %v279_v11 = vmul.f32 %v2952_v10, %v259_v2 }
 0x261   :  { %2621 = vmatprep.mubr.f32.mxu1 %v279_v11 }
 0x262   :  { %2622 = vmatmul.mubr.f32.vlgmr.msra.gmra.mrb[0].mxu1 %v280_v12 }
 0x263   :  { %2673 = vmatprep.mubr.msk.f32.mxu1 %vm3068_vm1, %v3067_v60 }
 0x335   :  { %v2623_v14 = vpop.f32.mrb[0].mxu1 }
 0x336   :  { %v376_v15 = vadd.f32 %v2623_v14, %v2434_v13  ;;  %v370_v16 = vpop.f32.mrb[1].mxu1 }
 0x337   :  { %v371_v17 = vadd.f32 %v2434_v13, %v370_v16 }
 0x338   :  { %v380_v18 = vmul.f32 0.5, %v376_v15 }
 0x339   :  { %v379_v19 = vmul.f32 0.5, %v371_v17 }
 0x33a   :  { %v3278_v20 = vadd.f32 %v380_v18, %v3241_v1 }
 0x33b   :  { %v3281_v21 = vadd.f32 %v379_v19, %v3238_v0 }
 0x33c   :  { %v388_v22 = vsel %vm131_vm0, %v3278_v20, 0.0 }
 0x33d   :  { %389 = vadd.xlane.f32.xlu1 %v388_v22  ;;  %v385_v23 = vsel %vm131_vm0, %v3281_v21, 0.0 }
 0x33e   :  { %386 = vadd.xlane.f32.xlu0 %v385_v23 }
 0x3ca   :  { %v390_v24 = vpop.xlane.xlu1 %389 }
 0x3cb   :  { %v392_v25 = vmul.f32 0.03125, %v390_v24  ;;  %v387_v26 = vpop.xlane.xlu0 %386 }
 0x3cc   :  { %v391_v1 = vmul.f32 0.03125, %v387_v26 }
 0x3cd   :  { %v394_v27 = vsub.f32 %v3278_v20, %v392_v25 }
 0x3ce   :  { %v393_v0 = vsub.f32 %v3281_v21, %v391_v1 }
 0x3cf   :  { %v396_v28 = vmul.f32 %v394_v27, %v394_v27 }
 0x3d0   :  { %v395_v29 = vmul.f32 %v393_v0, %v393_v0 }
 0x3d1   :  { %v400_v30 = vsel %vm131_vm0, %v396_v28, 0.0 }
 0x3d2   :  { %401 = vadd.xlane.f32.xlu1 %v400_v30  ;;  %v397_v31 = vsel %vm131_vm0, %v395_v29, 0.0 }
 0x3d3   :  { %398 = vadd.xlane.f32.xlu0 %v397_v31 }
 0x45f   :  { %v402_v41 = vpop.xlane.xlu1 %401 }
 0x460   :  { %v404_v42 = vmul.f32 0.03125, %v402_v41  ;;  %v399_v43 = vpop.xlane.xlu0 %398 }
 0x461   :  { %v403_v44 = vmul.f32 0.03125, %v399_v43 }
 0x462   :  { %v406_v45 = vadd.f32 1e-05, %v404_v42 }
 0x463   :  { %v405_v46 = vadd.f32 1e-05, %v403_v44 }
 0x464   :  { %2953 = vrsqrt.f32 %v406_v45 }
 0x465   :  { %2955 = vrsqrt.f32 %v405_v46 }
 0x46e   :  { %v2954_v47 = vpop.eup %2953 }
 0x46f   :  { %v2956_v49 = vpop.eup %2955  ;;  %v410_v50 = vmul.f32 %v2954_v47, %v394_v27 }
 0x470   :  { %v409_v51 = vmul.f32 %v2956_v49, %v393_v0 }
 0x471   :  { %v418_v53 = vmul.f32 %v2435_v48, %v410_v50 }
 0x472   :  { %v417_v54 = vmul.f32 %v2435_v48, %v409_v51 }
 0x473   :  { %v426_v58 = vadd.f32 %v2436_v52, %v418_v53 }
 0x474   :  { %v425_v57 = vadd.f32 %v2436_v52, %v417_v54 }
 0x476   :  { %2632 = vmatprep.mubr.msk.f32.mxu0 %vm131_vm0, %v425_v57 }
 0x477   :  { %2633 = vmatmul.mubr.msk.f32.vlgmr.msra.gmra.mrb[2].mxu0 %vm131_vm0, %v426_v58 }
 0x478   :  { %2824 = vmatpush3.bf16.msra.mxu0 %v2821_v40  ;;  %2643 = vmatprep.mubr.msk.f32.mxu0 %vm131_vm0, %v425_v57 }
 0x479   :  { %2826 = vmatprep.subr.bf16.mxu0 %v2825_v59 }
 0x47c   :  { %2828 = vmatpush3.bf16.msra.mxu0 %v2825_v59 }
 0x47d   :  { %2646 = vmatprep.subr.mxu0 %v3067_v60 }
 0x47f   :  { %2644 = vmatmul.mubr.msk.f32.vlgmr.msra.gmra.mrb[4].mxu0 %vm131_vm0, %v426_v58 }
 0x480   :  { %2648 = vmatprep.mubr.msk.f32.mxu0 %vm3068_vm1, %v3067_v60 }
 0x54a   :  { %v2634_v61 = vpop.f32.mrb[2].mxu0 }
 0x54b   :  { %v503_v62 = vpop.f32.mrb[3].mxu0  ;;  %v513_v4 = vmul.f32 0.25, %v2634_v61 }
 0x54c   :  { %v512_v3 = vmul.f32 0.25, %v503_v62  ;;  %v1261_v62 = vld [vmem:[%s3140_s24] sm:$0xff] }
 0x552   :  { %v3311_v63 = vpop.f32.mrb[4].mxu0 }
 0x553   :  { %v3313_v2 = vpop.f32.mrb[5].mxu0 }
 0x554   :  { %2647 = vmatpush3.xpose.msk.msra.mxu0 %vm593_vm2, %v3313_v2 }
 0x555   :  { %2651 = vmatprep.subr.mxu0 %v3067_v60 }
 0x557   :  { %2649 = vmatmul.mubr.msk.f32.vlgmr.msra.gmra.mrb[6].mxu0 %vm593_vm2, %v512_v3 }
 0x558   :  { %2652 = vmatpush3.xpose.msk.msra.mxu0 %vm593_vm2, %v3311_v63  ;;  %2653 = vmatprep.mubr.msk.f32.mxu0 %vm3068_vm1, %v3067_v60 }
 0x559   :  { %2656 = vmatprep.subr.mxu0 %v3067_v60 }
 0x55b   :  { %2654 = vmatmul.mubr.msk.f32.vlgmr.msra.gmra.mrb[8].mxu0 %vm593_vm2, %v513_v4 }
 0x55c   :  { %2658 = vmatprep.mubr.msk.f32.mxu0 %vm3068_vm1, %v3067_v60 }
 0x62a   :  { %v666_v5 = vpop.f32.mrb[6].mxu0 }
 0x62b   :  { %v2650_v6 = vpop.f32.mrb[7].mxu0  ;;  %v747_v7 = vsel %vm746_vm3, %v666_v5, -inf }
 0x62c   :  { %748 = vmax.xlane.f32.xlu0 %v747_v7  ;;  %v1264_v6 = vld [vmem:[%s3140_s24 + $0x18] sm:$0xff] }
 0x62e   :  { %v742_v8 = vpop.f32.mrb[8].mxu0 }
 0x62f   :  { %v2655_v9 = vpop.f32.mrb[9].mxu0  ;;  %v750_v10 = vsel %vm746_vm3, %v742_v8, -inf }
 0x630   :  { %751 = vmax.xlane.f32.xlu1 %v750_v10 }
 0x641   :  { %845 = vrot.lane.b32.xlu1 %v3311_v63, %s3069_s0 }
 0x645   :  { %923 = vrot.lane.b32.xlu1 %v3313_v2, %s3070_s5 }
 0x649   :  { %1001 = vrot.lane.b32.xlu1 %v3311_v63, %s3070_s5 }
 0x6b9   :  { %v749_v11 = vpop.xlane.xlu0 %748 }
 0x6ba   :  { %v753_v12 = vsub.f32 %v666_v5, %v749_v11  ;;  %v1263_v5 = vld [vmem:[%s3140_s24 + $0x10] sm:$0xff] }
 0x6bb   :  { %v2833_v7 = vpack.c.bf16 %v1264_v6, %v1263_v5  ;;  %v3417_v6 = vld [vmem:[#allocation2 + $0x28] sm:$0xff] }
 0x6bc   :  { %v755_v13 = vmul.f32 1.442695, %v753_v12 }
 0x6bd   :  { %v752_v14 = vpop.xlane.xlu1 %751 }
 0x6be   :  { %2957 = vpow2.f32 %v755_v13  ;;  %v754_v15 = vsub.f32 %v742_v8, %v752_v14  ;;  %v2453_v14 = vld [vmem:[%s3145_s30] ss:$0 sm:$0xff]  ;;  %s4067_s30 = sld [smem:[#allocation16_spill]] }
 0x6c0   :  { %v757_v16 = vmul.f32 1.442695, %v754_v15 }
 0x6c1   :  { %v846_v17 = vpop.permute.xlu1 %845 }
 0x6c2   :  { %2959 = vpow2.f32 %v757_v16 }
 0x6c5   :  { %v924_v18 = vpop.permute.xlu1 %923 }
 0x6c8   :  { %v2958_v19 = vpop.eup %2957 }
 0x6c9   :  { %v1002_v22 = vpop.permute.xlu1 %1001  ;;  %v759_v23 = vsel %vm746_vm3, %v2958_v19, 0.0 }
 0x6ca   :  { %760 = vadd.xlane.f32.xlu0 %v759_v23  ;;  %2672 = vmatpush3.xpose.msk.msra.mxu1 %vm593_vm2, %v1002_v22 }
 0x6cb   :  { %2681 = vmatprep.subr.mxu1 %v3067_v60 }
 0x6cc   :  { %v2960_v24 = vpop.eup %2959 }
 0x6cd   :  { %v762_v25 = vsel %vm746_vm3, %v2960_v24, 0.0 }
 0x6ce   :  { %763 = vadd.xlane.f32.xlu1 %v762_v25 }
 0x6df   :  { %999 = vrot.lane.b32.xlu1 %v513_v4, %s3070_s5 }
 0x6e0   :  { %769 = vrot.lane.b32.xlu0 %v3313_v2, %s3069_s0 }
 0x6e4   :  { %921 = vrot.lane.b32.xlu0 %v512_v3, %s3070_s5 }
 0x757   :  { %v761_v26 = vpop.xlane.xlu0 %760 }
 0x758   :  { %2961 = vrcp.f32 %v761_v26 }
 0x75b   :  { %v770_v1 = vpop.permute.xlu0 %769  ;;  %v764_v27 = vpop.xlane.xlu1 %763 }
 0x75c   :  { %2963 = vrcp.f32 %v764_v27  ;;  %2657 = vmatpush3.msra.mxu0 %v770_v1 }
 0x75d   :  { %2661 = vmatprep.subr.mxu0 %v3067_v60 }
 0x75f   :  { %v1000_v0 = vpop.permute.xlu1 %999  ;;  %v922_v32 = vpop.permute.xlu0 %921 }
 0x760   :  { %2674 = vmatmul.mubr.msk.f32.vlgmr.msra.gmra.mrb[2].mxu1 %vm593_vm2, %v1000_v0 }
 0x761   :  { %2683 = vmatprep.mubr.msk.f32.mxu1 %vm3068_vm1, %v3067_v60 }
 0x762   :  { %v2962_v28 = vpop.eup %2961 }
 0x763   :  { %v766_v29 = vmul.f32 %v2962_v28, %v2958_v19 }
 0x765   :  { %2659 = vmatmul.mubr.msk.f32.vlgmr.msra.gmra.mrb[10].mxu0 %vm746_vm3, %v766_v29 }
 0x766   :  { %v2964_v30 = vpop.eup %2963  ;;  %2662 = vmatpush3.msra.mxu0 %v846_v17  ;;  %2663 = vmatprep.mubr.msk.f32.mxu0 %vm3068_vm1, %v3067_v60 }
 0x767   :  { %v768_v31 = vmul.f32 %v2964_v30, %v2960_v24  ;;  %2666 = vmatprep.subr.mxu0 %v3067_v60 }
 0x769   :  { %2664 = vmatmul.mubr.msk.f32.vlgmr.msra.gmra.mrb[12].mxu0 %vm746_vm3, %v768_v31  ;;  %v1399_v31 = vld [vmem:[%s3160_s20] sm:$0xff] }
 0x76a   :  { %2668 = vmatprep.mubr.msk.f32.mxu0 %vm3068_vm1, %v3067_v60 }
 0x76d   :  { %2667 = vmatpush3.xpose.msk.msra.mxu0 %vm593_vm2, %v924_v18 }
 0x76e   :  { %2676 = vmatprep.subr.mxu0 %v3067_v60 }
 0x770   :  { %2669 = vmatmul.mubr.msk.f32.vlgmr.msra.gmra.mrb[14].mxu0 %vm593_vm2, %v922_v32  ;;  %v1400_v32 = vld [vmem:[%s3160_s20 + $0x8] sm:$0xff] }
 0x771   :  { %2678 = vmatprep.mubr.msk.f32.mxu0 %vm3068_vm1, %v3067_v60 }
 0x833   :  { %v1073_v33 = vpop.f32.mrb[2].mxu1 }
 0x834   :  { %v2675_v34 = vpop.f32.mrb[3].mxu1  ;;  %v1080_v35 = vsel %vm746_vm3, %v1073_v33, -inf }
 0x835   :  { %1081 = vmax.xlane.f32.xlu1 %v1080_v35  ;;  %v1401_v34 = vld [vmem:[%s3160_s20 + $0x10] sm:$0xff]  ;;  %v1402_v35 = vld [vmem:[%s3160_s20 + $0x18] sm:$0xff]  ;;  %s4068_s20 = sld [smem:[#allocation14_spill]] }
 0x838   :  { %v841_v36 = vpop.f32.mrb[10].mxu0 }
 0x839   :  { %v2660_v37 = vpop.f32.mrb[11].mxu0 }
 0x83c   :  { %v917_v38 = vpop.f32.mrb[12].mxu0 }
 0x83d   :  { %v2665_v39 = vpop.f32.mrb[13].mxu0 }
 0x843   :  { %v995_v40 = vpop.f32.mrb[14].mxu0 }
 0x844   :  { %v2670_v41 = vpop.f32.mrb[15].mxu0  ;;  %v1077_v42 = vsel %vm746_vm3, %v995_v40, -inf }
 0x845   :  { %1078 = vmax.xlane.f32.xlu0 %v1077_v42 }
 0x846   :  { %1175 = vrot.lane.b32.xlu1 %v3311_v63, %s3071_s9  ;;  %v1262_v63 = vld [vmem:[%s3140_s24 + $0x8] sm:$0xff]  ;;  %s4066_s24 = sld [smem:[#allocation13_spill]] }
 0x847   :  { %v2829_v3 = vpack.c.bf16 %v1262_v63, %v1261_v62 }
 0x8c2   :  { %v1082_v43 = vpop.xlane.xlu1 %1081 }
 0x8c3   :  { %v1084_v44 = vsub.f32 %v1073_v33, %v1082_v43  ;;  %v2837_v33 = vpack.c.bf16 %v1400_v32, %v1399_v31 }
 0x8c5   :  { %v1087_v45 = vmul.f32 1.442695, %v1084_v44  ;;  %v2456_v44 = vld [vmem:[%s4050_s17] ss:$0 sm:$0xff] }
 0x8c6   :  { %v1176_v46 = vpop.permute.xlu1 %1175 }
 0x8c7   :  { %2965 = vpow2.f32 %v1087_v45  ;;  %2682 = vmatpush3.msra.mxu1 %v1176_v46  ;;  %v2457_v46 = vld [vmem:[%s4051_s21] ss:$0 sm:$0xff] }
 0x8d1   :  { %v2966_v47 = vpop.eup %2965 }
 0x8d2   :  { %v1079_v48 = vpop.xlane.xlu0 %1078  ;;  %v1092_v49 = vsel %vm746_vm3, %v2966_v47, 0.0 }
 0x8d3   :  { %v1083_v50 = vsub.f32 %v995_v40, %v1079_v48  ;;  %1093 = vadd.xlane.f32.xlu0 %v1092_v49 }
 0x8d5   :  { %v1085_v51 = vmul.f32 1.442695, %v1083_v50 }
 0x8d7   :  { %2967 = vpow2.f32 %v1085_v51 }
 0x8e1   :  { %v2968_v52 = vpop.eup %2967 }
 0x8e2   :  { %v1089_v53 = vsel %vm746_vm3, %v2968_v52, 0.0 }
 0x8e3   :  { %1090 = vadd.xlane.f32.xlu0 %v1089_v53  ;;  %v2458_v53 = vld [vmem:[%s4052_s25] ss:$0 sm:$0xff] }
 0x8f9   :  { %1099 = vrot.lane.b32.xlu0 %v3313_v2, %s3071_s9 }
 0x960   :  { %v1094_v54 = vpop.xlane.xlu0 %1093 }
 0x961   :  { %2969 = vrcp.f32 %v1094_v54 }
 0x96b   :  { %v2970_v55 = vpop.eup %2969 }
 0x96c   :  { %v1098_v56 = vmul.f32 %v2970_v55, %v2966_v47 }
 0x96e   :  { %2684 = vmatmul.mubr.msk.f32.vlgmr.msra.gmra.mrb[4].mxu1 %vm746_vm3, %v1098_v56 }
 0x970   :  { %v1091_v57 = vpop.xlane.xlu0 %1090 }
 0x971   :  { %2971 = vrcp.f32 %v1091_v57 }
 0x974   :  { %v1100_v58 = vpop.permute.xlu0 %1099 }
 0x975   :  { %2677 = vmatpush3.msra.mxu0 %v1100_v58 }
 0x976   :  { %2830 = vmatprep.subr.bf16.mxu0 %v2829_v3 }
 0x97b   :  { %v2972_v59 = vpop.eup %2971 }
 0x97c   :  { %v1096_v61 = vmul.f32 %v2972_v59, %v2968_v52 }
 0x97e   :  { %2679 = vmatmul.mubr.msk.f32.vlgmr.msra.gmra.mrb[16].mxu0 %vm746_vm3, %v1096_v61 }
 0x97f   :  { %2832 = vmatpush3.bf16.msra.mxu0 %v2829_v3 }
 0x980   :  { %2834 = vmatprep.subr.bf16.mxu0 %v2833_v7 }
 0x983   :  { %2836 = vmatpush3.bf16.msra.mxu0 %v2833_v7  ;;  %v3419_v7 = vld [vmem:[#allocation2 + $0x30] sm:$0xff] }
 0x984   :  { %2838 = vmatprep.subr.bf16.mxu0 %v2837_v33 }
 0xa41   :  { %v1247_v2 = vpop.f32.mrb[4].mxu1 }
 0xa42   :  { %v2685_v4 = vpop.f32.mrb[5].mxu1 }
 0xa43   :  { %v1547_v4 = vlaneseq }
 0xa45   :  { %v3415_v5 = vshrl.u32 %v1547_v4, 7 }
 0xa47   :  { %vm1549_vm5 = vcmp.lt.s32.totalorder %v3415_v5, 7  ;;  %vm1564_vm6 = vcmp.lt.s32.totalorder %v3415_v5, 6  ;;  %vm1579_vm7 = vcmp.lt.s32.totalorder %v3415_v5, 5  ;;  %vm1594_vm8 = vcmp.lt.s32.totalorder %v3415_v5, 4 }
 0xa48   :  { %vm1609_vm9 = vcmp.lt.s32.totalorder %v3415_v5, 3  ;;  %vm1624_vm10 = vcmp.lt.s32.totalorder %v3415_v5, 2  ;;  %vm1639_vm11 = vcmp.lt.s32.totalorder %v3415_v5, 1 }
 0xa51   :  { %v1171_v8 = vpop.f32.mrb[16].mxu0 }
 0xa52   :  { %1253 = vrot.lane.b32.xlu1 %v1171_v8, %s3072_s13  ;;  %v2680_v9 = vpop.f32.mrb[17].mxu0  ;;  %v3421_v8 = vld [vmem:[#allocation2] sm:$0xff] }
 0xa53   :  { %v3423_v9 = vld [vmem:[#allocation2 + $0x8] sm:$0xff]  ;;  %v1575_v32 = vrot.slane %v3421_v8, 3 }
 0xa56   :  { %1255 = vrot.lane.b32.xlu1 %v1247_v2, %s3072_s13 }
 0xac4   :  { %v1254_v10 = vpop.permute.xlu1 %1253 }
 0xac5   :  { %v1259_v11 = vsel %vm593_vm2, %v841_v36, %v1254_v10  ;;  %v2841_v36 = vpack.c.bf16 %v1402_v35, %v1401_v34  ;;  %v3426_v10 = vsub.s32 0, %v3415_v5  ;;  %v3475_v35 = vsub.s32 3, %v3415_v5 }
 0xac6   :  { %2694 = vmatprep.mubr.msk.f32.mxu0 %vm131_vm0, %v1259_v11  ;;  %v3429_v11 = vsub.s32 1, %v3415_v5 }
 0xac8   :  { %v1256_v12 = vpop.permute.xlu1 %1255 }
 0xac9   :  { %v1260_v13 = vsel %vm593_vm2, %v917_v38, %v1256_v12  ;;  %v3432_v12 = vld [vmem:[%s4053_s29] sm:$0xff] }
 0xaca   :  { %2695 = vmatmul.mubr.msk.f32.vlgmr.msra.gmra.mrb[18].mxu0 %vm131_vm0, %v1260_v13  ;;  %v1544_v13 = vrot.slane %v3417_v6, 1 }
 0xacb   :  { %2840 = vmatpush3.bf16.msra.mxu0 %v2837_v33  ;;  %v1577_v33 = vrot.slane %v3423_v9, 3 }
 0xacc   :  { %2842 = vmatprep.subr.bf16.mxu0 %v2841_v36 }
 0xacf   :  { %2844 = vmatpush3.bf16.msra.mxu0 %v2841_v36 }
 0xb9d   :  { %v2696_v15 = vpop.f32.mrb[18].mxu0 }
 0xb9e   :  { %v1350_v16 = vadd.f32 %v2696_v15, %v2453_v14  ;;  %v1344_v17 = vpop.f32.mrb[19].mxu0  ;;  %v1561_v15 = vrot.slane %v3417_v6, 2 }
 0xb9f   :  { %v1345_v18 = vadd.f32 %v2453_v14, %v1344_v17  ;;  %v1546_v14 = vrot.slane %v3419_v7, 1  ;;  %v1543_v17 = vrot.slane %v3421_v8, 1 }
 0xba0   :  { %v3371_v19 = vadd.f32 %v1350_v16, %v3278_v20  ;;  %v1563_v16 = vrot.slane %v3419_v7, 2 }
 0xba1   :  { %v3374_v22 = vadd.f32 %v1345_v18, %v3281_v21  ;;  %v1545_v18 = vrot.slane %v3423_v9, 1 }
 0xba2   :  { %v1360_v23 = vsel %vm131_vm0, %v3371_v19, 0.0 }
 0xba3   :  { %1361 = vadd.xlane.f32.xlu1 %v1360_v23  ;;  %v1357_v24 = vsel %vm131_vm0, %v3374_v22, 0.0  ;;  %v1555_v23 = vrot.slane %v3432_v12, %v3426_v10 }
 0xba4   :  { %1358 = vadd.xlane.f32.xlu0 %v1357_v24  ;;  %v1560_v24 = vrot.slane %v3421_v8, 2 }
 0xc30   :  { %v1362_v25 = vpop.xlane.xlu1 %1361 }
 0xc31   :  { %v1364_v26 = vmul.f32 0.03125, %v1362_v25  ;;  %v1359_v1 = vpop.xlane.xlu0 %1358  ;;  %v1562_v25 = vrot.slane %v3423_v9, 2 }
 0xc32   :  { %v1363_v20 = vmul.f32 0.03125, %v1359_v1  ;;  %v1551_v1 = vsel %vm1549_vm5, %v1544_v13, %v1546_v14 }
 0xc33   :  { %v1366_v27 = vsub.f32 %v3371_v19, %v1364_v26  ;;  %v1570_v26 = vrot.slane %v3432_v12, %v3429_v11 }
 0xc34   :  { %v1365_v21 = vsub.f32 %v3374_v22, %v1363_v20  ;;  %v1566_v20 = vsel %vm1564_vm6, %v1561_v15, %v1563_v16 }
 0xc35   :  { %v1368_v29 = vmul.f32 %v1366_v27, %v1366_v27  ;;  %v1572_v31 = vmul.f32 %v1570_v26, %v1566_v20 }
 0xc36   :  { %v1367_v0 = vmul.f32 %v1365_v21, %v1365_v21 }
 0xc37   :  { %v1372_v30 = vsel %vm131_vm0, %v1368_v29, 0.0  ;;  %v1557_v29 = vmul.f32 %v1555_v23, %v1551_v1  ;;  %v1638_v1 = vrot.slane %v3419_v7, 7 }
 0xc38   :  { %v1369_v28 = vsel %vm131_vm0, %v1367_v0, 0.0  ;;  %v1578_v0 = vrot.slane %v3419_v7, 3 }
 0xc39   :  { %1370 = vadd.xlane.f32.xlu0 %v1369_v28  ;;  %v1550_v28 = vsel %vm1549_vm5, %v1543_v17, %v1545_v18  ;;  %v3523_v17 = vsub.s32 6, %v3415_v5 }
 0xc3d   :  { %1373 = vadd.xlane.f32.xlu0 %v1372_v30  ;;  %v1565_v30 = vsel %vm1564_vm6, %v1560_v24, %v1562_v25 }
 0xcc6   :  { %v1371_v37 = vpop.xlane.xlu0 %1370 }
 0xcc7   :  { %v1375_v38 = vmul.f32 0.03125, %v1371_v37  ;;  %v1591_v37 = vrot.slane %v3417_v6, 4 }
 0xcc9   :  { %v1377_v39 = vadd.f32 1e-05, %v1375_v38  ;;  %v1593_v38 = vrot.slane %v3419_v7, 4 }
 0xcca   :  { %v1374_v40 = vpop.xlane.xlu0 %1373 }
 0xccb   :  { %2973 = vrsqrt.f32 %v1377_v39  ;;  %v1376_v41 = vmul.f32 0.03125, %v1374_v40  ;;  %v1556_v39 = vmul.f32 %v1555_v23, %v1550_v28  ;;  %v1571_v40 = vmul.f32 %v1570_v26, %v1565_v30 }
 0xccc   :  { %v1636_v26 = vrot.slane %v3417_v6, 7  ;;  %v1622_v28 = vrot.slane %v3423_v9, 6 }
 0xccd   :  { %v1378_v42 = vadd.f32 1e-05, %v1376_v41  ;;  %v1574_v41 = vadd.f32 %v1572_v31, %v1557_v29 }
 0xccf   :  { %2975 = vrsqrt.f32 %v1378_v42  ;;  %v1580_v42 = vsel %vm1579_vm7, %v1575_v32, %v1577_v33  ;;  %v1645_v32 = vrot.slane %v3432_v12, %v3523_v17 }
 0xcd5   :  { %v2974_v43 = vpop.eup %2973 }
 0xcd6   :  { %v1381_v45 = vmul.f32 %v2974_v43, %v1365_v21  ;;  %v1576_v21 = vrot.slane %v3417_v6, 3 }
 0xcd8   :  { %v1389_v47 = vmul.f32 %v2456_v44, %v1381_v45  ;;  %v1581_v36 = vsel %vm1579_vm7, %v1576_v21, %v1578_v0  ;;  %v3491_v45 = vsub.s32 4, %v3415_v5  ;;  %v1620_v21 = vrot.slane %v3421_v8, 6 }
 0xcd9   :  { %v2976_v48 = vpop.eup %2975 }
 0xcda   :  { %v1382_v49 = vmul.f32 %v2976_v48, %v1366_v27  ;;  %v1397_v50 = vadd.f32 %v2457_v46, %v1389_v47  ;;  %v3457_v27 = vsub.s32 2, %v3415_v5  ;;  %v1606_v47 = vrot.slane %v3417_v6, 5 }
 0xcdb   :  { %v1608_v48 = vrot.slane %v3419_v7, 5 }
 0xcdc   :  { %v1390_v51 = vmul.f32 %v2456_v44, %v1382_v49  ;;  %2705 = vmatprep.mubr.msk.f32.mxu0 %vm131_vm0, %v1397_v50  ;;  %v1585_v34 = vrot.slane %v3432_v12, %v3457_v27  ;;  %v1600_v44 = vrot.slane %v3432_v12, %v3475_v35  ;;  %v1590_v49 = vrot.slane %v3421_v8, 4 }
 0xcdd   :  { %v1592_v50 = vrot.slane %v3423_v9, 4 }
 0xcde   :  { %v1398_v52 = vadd.f32 %v2457_v46, %v1390_v51  ;;  %v1587_v43 = vmul.f32 %v1585_v34, %v1581_v36  ;;  %v1596_v46 = vsel %vm1594_vm8, %v1591_v37, %v1593_v38  ;;  %v1573_v51 = vadd.f32 %v1571_v40, %v1556_v39 }
 0xcdf   :  { %v1641_v40 = vsel %vm1639_vm11, %v1636_v26, %v1638_v1 }
 0xce0   :  { %2706 = vmatmul.mubr.msk.f32.vlgmr.msra.gmra.mrb[20].mxu0 %vm131_vm0, %v1398_v52  ;;  %v1586_v52 = vmul.f32 %v1585_v34, %v1580_v42  ;;  %v1625_v42 = vsel %vm1624_vm10, %v1620_v21, %v1622_v28 }
 0xdb3   :  { %v2707_v54 = vpop.f32.mrb[20].mxu0 }
 0xdb4   :  { %v3409_v55 = vadd.f32 %v2707_v54, %v2458_v53  ;;  %v1482_v56 = vpop.f32.mrb[21].mxu0  ;;  %v1602_v54 = vmul.f32 %v1600_v44, %v1596_v46  ;;  %v1647_v46 = vmul.f32 %v1645_v32, %v1641_v40 }
 0xdb5   :  { %v3411_v57 = vadd.f32 %v2458_v53, %v1482_v56  ;;  %v1589_v53 = vadd.f32 %v1587_v43, %v1574_v41  ;;  %v1615_v56 = vrot.slane %v3432_v12, %v3491_v45  ;;  %v1635_v43 = vrot.slane %v3421_v8, 7 }
 0xdb6   :  { %v2462_v58 = vmul.f32 -1.442695, %v3409_v55 }
 0xdb7   :  { %v2461_v59 = vmul.f32 -1.442695, %v3411_v57  ;;  %v1604_v4 = vadd.f32 %v1602_v54, %v1589_v53  ;;  %v3565_v54 = vld [vmem:[#allocation2 + $0x40] sm:$0xff] }
 0xdb8   :  { %2977 = vpow2.f32 %v2462_v58  ;;  %v3505_v58 = vsub.s32 5, %v3415_v5 }
 0xdb9   :  { %2979 = vpow2.f32 %v2461_v59  ;;  %v1611_v59 = vsel %vm1609_vm9, %v1606_v47, %v1608_v48 }
 0xdba   :  { %v1617_v13 = vmul.f32 %v1615_v56, %v1611_v59  ;;  %v1630_v15 = vrot.slane %v3432_v12, %v3505_v58 }
 0xdbc   :  { %v1619_v30 = vadd.f32 %v1617_v13, %v1604_v4 }
 0xdc2   :  { %v2978_v61 = vpop.eup %2977 }
 0xdc3   :  { %v2980_v62 = vpop.eup %2979  ;;  %v1498_v63 = vadd.f32 1.0, %v2978_v61  ;;  %v1621_v61 = vrot.slane %v3417_v6, 6  ;;  %v3541_v6 = vsub.s32 7, %v3415_v5 }
 0xdc4   :  { %v1497_v3 = vadd.f32 1.0, %v2980_v62  ;;  %v1623_v62 = vrot.slane %v3419_v7, 6 }
 0xdc5   :  { %2981 = vrcp.f32 %v1498_v63  ;;  %v1595_v63 = vsel %vm1594_vm8, %v1590_v49, %v1592_v50  ;;  %v1653_v47 = vrot.slane %v3432_v12, %v3541_v6 }
 0xdc6   :  { %2983 = vrcp.f32 %v1497_v3  ;;  %v1605_v3 = vrot.slane %v3421_v8, 5  ;;  %v1601_v23 = vmul.f32 %v1600_v44, %v1595_v63  ;;  %v1626_v24 = vsel %vm1624_vm10, %v1621_v61, %v1623_v62  ;;  %v1540_v8 = vld [vmem:[%s4053_s29 + $0x8] sm:$0xff] }
 0xdc7   :  { %v1632_v31 = vmul.f32 %v1630_v15, %v1626_v24  ;;  %v1655_v53 = vmul.f32 %v1653_v47, %v3419_v7  ;;  %v1665_v61 = vrot.slane %v1540_v8, %v3426_v10  ;;  %v3569_v12 = vrot.slane %v1540_v8, %v3429_v11 }
 0xdc8   :  { %v3580_v4 = vrot.slane %v1540_v8, %v3491_v45  ;;  %v3583_v13 = vrot.slane %v1540_v8, %v3505_v58  ;;  %v1654_v21 = vmul.f32 %v1653_v47, %v3423_v9 }
 0xdc9   :  { %v1634_v44 = vadd.f32 %v1632_v31, %v1619_v30  ;;  %v3596_v30 = vrot.slane %v1540_v8, %v3541_v6  ;;  %v1751_v31 = vrot.slane %v3565_v54, 1 }
 0xdcf   :  { %v2982_v60 = vpop.eup %2981 }
 0xdd0   :  { %v2984_v2 = vpop.eup %2983  ;;  %1507 = vrot.lane.b32.xlu1 %v2982_v60, %s3073_s3  ;;  %v1607_v60 = vrot.slane %v3423_v9, 5 }
 0xdd1   :  { %1505 = vrot.lane.b32.xlu0 %v2984_v2, %s3073_s3  ;;  %v1588_v2 = vadd.f32 %v1586_v52, %v1573_v51  ;;  %v1649_v52 = vadd.f32 %v1647_v46, %v1634_v44 }
 0xdd2   :  { %v1610_v20 = vsel %vm1609_vm9, %v1605_v3, %v1607_v60  ;;  %v3574_v3 = vrot.slane %v1540_v8, %v3457_v27 }
 0xdd3   :  { %v1603_v37 = vadd.f32 %v1601_v23, %v1588_v2  ;;  %v1616_v39 = vmul.f32 %v1615_v56, %v1610_v20  ;;  %v3577_v2 = vrot.slane %v1540_v8, %v3475_v35  ;;  %v3592_v20 = vrot.slane %v1540_v8, %v3523_v17 }
 0xdd5   :  { %v1618_v49 = vadd.f32 %v1616_v39, %v1603_v37 }
 0xe42   :  { %v1508_v29 = vpop.permute.xlu1 %1507 }
 0xe43   :  { %v1512_v34 = vmul.f32 %v1508_v29, %v3409_v55  ;;  %v1506_v36 = vpop.permute.xlu0 %1505  ;;  %v1637_v55 = vrot.slane %v3423_v9, 7  ;;  %v1657_v29 = vadd.f32 %v1655_v53, %v1649_v52  ;;  %v1799_v53 = vrot.slane %v3565_v54, 5 }
 0xe44   :  { %v1511_v41 = vmul.f32 %v1506_v36, %v3411_v57  ;;  %v1631_v57 = vmul.f32 %v1630_v15, %v1625_v42  ;;  %v3586_v15 = vld [vmem:[%s4053_s29 + $0x10] sm:$0xff] }
 0xe45   :  { %1528 = vst.msk [vmem:[#allocation2 + $0x38] sm:$0xff] %vm1517_vm4, %v1512_v34  ;;  %v1640_v51 = vsel %vm1639_vm11, %v1635_v43, %v1637_v55  ;;  %v3614_v40 = vrot.slane %v3586_v15, %v3426_v10  ;;  %v3619_v42 = vrot.slane %v3586_v15, %v3429_v11  ;;  %v1775_v43 = vrot.slane %v3565_v54, 3 }
 0xe46   :  { %1527 = vst.msk [vmem:[#allocation2 + $0x10] sm:$0xff] %vm1517_vm4, %v1511_v41  ;;  %v1633_v56 = vadd.f32 %v1631_v57, %v1618_v49  ;;  %v1646_v59 = vmul.f32 %v1645_v32, %v1640_v51  ;;  %v1763_v41 = vrot.slane %v3565_v54, 2  ;;  %v3631_v44 = vrot.slane %v3586_v15, %v3457_v27 }
 0xe47   :  { %v1787_v51 = vrot.slane %v3565_v54, 4  ;;  %v3646_v52 = vrot.slane %v3586_v15, %v3475_v35 }
 0xe48   :  { %v1648_v32 = vadd.f32 %v1646_v59, %v1633_v56 }
 0xe4a   :  { %v1656_v8 = vadd.f32 %v1654_v21, %v1648_v32 }
 0xe4c   :  { %v3571_v63 = vld [vmem:[#allocation2 + $0x38] sm:$0xff] }
 0xe4d   :  { %v1659_v23 = vrot.slane %v3571_v63, 1  ;;  %v1671_v24 = vrot.slane %v3571_v63, 2  ;;  %v1683_v26 = vrot.slane %v3571_v63, 3  ;;  %v1695_v37 = vrot.slane %v3571_v63, 4  ;;  %v3633_v46 = vld [vmem:[#allocation2 + $0x10] sm:$0xff] }
 0xe4e   :  { %v4033_v57 = vrot.slane %v3571_v63, 6  ;;  %v4034_v32 = vrot.slane %v3571_v63, 7 }
 0xe4f   :  { %v1661_v34 = vsel %vm1549_vm5, %v1546_v14, %v1659_v23  ;;  %v1673_v36 = vsel %vm1564_vm6, %v1563_v16, %v1671_v24  ;;  %v1685_v14 = vsel %vm1579_vm7, %v1578_v0, %v1683_v26  ;;  %v4032_v16 = vrot.slane %v3571_v63, 5 }
 0xe50   :  { %v1667_v39 = vmul.f32 %v1665_v61, %v1661_v34  ;;  %v1679_v49 = vmul.f32 %v3569_v12, %v1673_v36  ;;  %v1697_v0 = vsel %vm1594_vm8, %v1593_v38, %v1695_v37  ;;  %v1691_v59 = vmul.f32 %v3574_v3, %v1685_v14 }
 0xe51   :  { %v1709_v38 = vsel %vm1609_vm9, %v1608_v48, %v4032_v16  ;;  %v3664_v34 = vrot.slane %v3586_v15, %v3505_v58  ;;  %v1658_v36 = vrot.slane %v3633_v46, 1  ;;  %v1703_v14 = vmul.f32 %v3577_v2, %v1697_v0 }
 0xe52   :  { %v1669_v47 = vadd.f32 %v1667_v39, %v1657_v29  ;;  %v3652_v29 = vrot.slane %v3586_v15, %v3491_v45  ;;  %v4036_v0 = vrot.slane %v3633_v46, 3  ;;  %v1715_v16 = vmul.f32 %v3580_v4, %v1709_v38 }
 0xe53   :  { %v1789_v9 = vsel %vm1594_vm8, %v1695_v37, %v1787_v51 }
 0xe54   :  { %v1681_v56 = vadd.f32 %v1679_v49, %v1669_v47  ;;  %v1721_v47 = vsel %vm1624_vm10, %v1623_v62, %v4033_v57  ;;  %v1660_v49 = vsel %vm1549_vm5, %v1545_v18, %v1658_v36  ;;  %v3687_v62 = vrot.slane %v3586_v15, %v3523_v17  ;;  %v3689_v57 = vld [vmem:[#allocation2 + $0x18] sm:$0xff] }
 0xe55   :  { %v1666_v48 = vmul.f32 %v1665_v61, %v1660_v49  ;;  %v1733_v18 = vsel %vm1639_vm11, %v1638_v1, %v4034_v32  ;;  %v1684_v61 = vsel %vm1579_vm7, %v1577_v33, %v4036_v0  ;;  %v1718_v32 = vrot.slane %v3633_v46, 6 }
 0xe56   :  { %v1693_v39 = vadd.f32 %v1691_v59, %v1681_v56  ;;  %v4035_v56 = vrot.slane %v3633_v46, 2  ;;  %v1694_v59 = vrot.slane %v3633_v46, 4  ;;  %v1762_v33 = vrot.slane %v3689_v57, 2 }
 0xe57   :  { %v1668_v1 = vadd.f32 %v1666_v48, %v1656_v8  ;;  %v1690_v8 = vmul.f32 %v3574_v3, %v1684_v61  ;;  %v1774_v48 = vrot.slane %v3689_v57, 3 }
 0xe58   :  { %v1705_v21 = vadd.f32 %v1703_v14, %v1693_v39  ;;  %v1672_v38 = vsel %vm1564_vm6, %v1562_v25, %v4035_v56  ;;  %v1706_v39 = vrot.slane %v3633_v46, 5  ;;  %v1727_v14 = vmul.f32 %v3583_v13, %v1721_v47 }
 0xe59   :  { %v1678_v49 = vmul.f32 %v3569_v12, %v1672_v38  ;;  %v1696_v25 = vsel %vm1594_vm8, %v1592_v50, %v1694_v59  ;;  %v1750_v56 = vrot.slane %v3689_v57, 1  ;;  %v1753_v12 = vsel %vm1549_vm5, %v1659_v23, %v1751_v31 }
 0xe5a   :  { %v1717_v7 = vadd.f32 %v1715_v16, %v1705_v21  ;;  %v1739_v16 = vmul.f32 %v3592_v20, %v1733_v18  ;;  %v1708_v50 = vsel %vm1609_vm9, %v1607_v60, %v1706_v39  ;;  %v1730_v47 = vrot.slane %v3633_v46, 7  ;;  %v3737_v18 = vld [vmem:[#allocation2 + $0x48] sm:$0xff] }
 0xe5b   :  { %v1680_v21 = vadd.f32 %v1678_v49, %v1668_v1  ;;  %v1747_v38 = vmul.f32 %v3596_v30, %v3571_v63  ;;  %v1702_v23 = vmul.f32 %v3577_v2, %v1696_v25  ;;  %v1765_v60 = vsel %vm1564_vm6, %v1671_v24, %v1763_v41 }
 0xe5c   :  { %v1729_v0 = vadd.f32 %v1727_v14, %v1717_v7  ;;  %v3750_v7 = vrot.slane %v3586_v15, %v3541_v6  ;;  %v1786_v2 = vrot.slane %v3689_v57, 4  ;;  %v1759_v1 = vmul.f32 %v3614_v40, %v1753_v12 }
 0xe5d   :  { %v1692_v61 = vadd.f32 %v1690_v8, %v1680_v21  ;;  %v1714_v25 = vmul.f32 %v3580_v4, %v1708_v50  ;;  %v1777_v6 = vsel %vm1579_vm7, %v1683_v26, %v1775_v43  ;;  %v1843_v15 = vrot.slane %v3737_v18, 1 }
 0xe5e   :  { %v1741_v3 = vadd.f32 %v1739_v16, %v1729_v0  ;;  %v1720_v0 = vsel %vm1624_vm10, %v1622_v28, %v1718_v32  ;;  %v1732_v28 = vsel %vm1639_vm11, %v1637_v55, %v1730_v47  ;;  %v1798_v24 = vrot.slane %v3689_v57, 5  ;;  %v3776_v16 = vld [vmem:[%s4053_s29 + $0x18] sm:$0x7f] }
 0xe5f   :  { %v1704_v49 = vadd.f32 %v1702_v23, %v1692_v61  ;;  %v1771_v21 = vmul.f32 %v3619_v42, %v1765_v60  ;;  %v1726_v12 = vmul.f32 %v3583_v13, %v1720_v0  ;;  %v1839_v55 = vmul.f32 %v3750_v7, %v3565_v54 }
 0xe60   :  { %v1749_v14 = vadd.f32 %v1747_v38, %v1741_v3  ;;  %v1810_v26 = vrot.slane %v3689_v57, 6  ;;  %v1822_v50 = vrot.slane %v3689_v57, 7  ;;  %v1783_v38 = vmul.f32 %v3631_v44, %v1777_v6 }
 0xe61   :  { %v1716_v8 = vadd.f32 %v1714_v25, %v1704_v49  ;;  %v1738_v13 = vmul.f32 %v3592_v20, %v1732_v28  ;;  %v4054_v23 = vrot.slane %v3571_v63, 5  ;;  %v1845_v60 = vsel %vm1549_vm5, %v1751_v31, %v1843_v15 }
 0xe62   :  { %v1761_v4 = vadd.f32 %v1759_v1, %v1749_v14  ;;  %v3804_v0 = vrot.slane %v3776_v16, %v3426_v10  ;;  %v1752_v20 = vsel %vm1549_vm5, %v1658_v36, %v1750_v56  ;;  %v1795_v1 = vmul.f32 %v3646_v52, %v1789_v9 }
 0xe63   :  { %v1728_v61 = vadd.f32 %v1726_v12, %v1716_v8  ;;  %v1801_v37 = vsel %vm1609_vm9, %v4054_v23, %v1799_v53  ;;  %v1746_v25 = vmul.f32 %v3596_v30, %v3633_v46  ;;  %v4055_v31 = vrot.slane %v3565_v54, 6 }
 0xe64   :  { %v1773_v3 = vadd.f32 %v1771_v21, %v1761_v4  ;;  %v4056_v6 = vrot.slane %v3571_v63, 6  ;;  %v1855_v15 = vrot.slane %v3737_v18, 2  ;;  %v1867_v28 = vrot.slane %v3737_v18, 3 }
 0xe65   :  { %v1740_v49 = vadd.f32 %v1738_v13, %v1728_v61  ;;  %v4057_v36 = vrot.slane %v3633_v46, 2  ;;  %v1807_v30 = vmul.f32 %v3652_v29, %v1801_v37  ;;  %v1758_v12 = vmul.f32 %v3614_v40, %v1752_v20 }
 0xe66   :  { %v1785_v14 = vadd.f32 %v1783_v38, %v1773_v3  ;;  %v1813_v10 = vsel %vm1624_vm10, %v4056_v6, %v4055_v31  ;;  %v4058_v9 = vrot.slane %v3565_v54, 7  ;;  %v4059_v3 = vrot.slane %v3571_v63, 7  ;;  %v3865_v6 = vld [vmem:[#allocation2 + $0x20] sm:$0xff] }
 0xe67   :  { %v1764_v4 = vsel %vm1564_vm6, %v4057_v36, %v1762_v33  ;;  %v1748_v8 = vadd.f32 %v1746_v25, %v1740_v49  ;;  %v1861_v61 = vrot.slane %v3776_v16, %v3429_v11  ;;  %v1879_v13 = vrot.slane %v3737_v18, 4 }
 0xe68   :  { %v1797_v21 = vadd.f32 %v1795_v1, %v1785_v14  ;;  %v1825_v38 = vsel %vm1639_vm11, %v4059_v3, %v4058_v9  ;;  %v4060_v23 = vrot.slane %v3633_v46, 3  ;;  %v1819_v20 = vmul.f32 %v3664_v34, %v1813_v10 }
 0xe69   :  { %v1760_v14 = vadd.f32 %v1758_v12, %v1748_v8  ;;  %v1770_v63 = vmul.f32 %v3619_v42, %v1764_v4  ;;  %v1857_v11 = vsel %vm1564_vm6, %v1763_v41, %v1855_v15  ;;  %v1869_v1 = vsel %vm1579_vm7, %v1775_v43, %v1867_v28 }
 0xe6a   :  { %v1776_v37 = vsel %vm1579_vm7, %v4060_v23, %v1774_v48  ;;  %v1809_v40 = vadd.f32 %v1807_v30, %v1797_v21  ;;  %v1873_v49 = vrot.slane %v3776_v16, %v3457_v27  ;;  %v1788_v42 = vsel %vm1594_vm8, %v1694_v59, %v1786_v2 }
 0xe6b   :  { %v1831_v31 = vmul.f32 %v3687_v62, %v1825_v38  ;;  %v1772_v41 = vadd.f32 %v1770_v63, %v1760_v14  ;;  %v1782_v10 = vmul.f32 %v3631_v44, %v1776_v37  ;;  %v1851_v43 = vmul.f32 %v3804_v0, %v1845_v60 }
 0xe6c   :  { %v1821_v25 = vadd.f32 %v1819_v20, %v1809_v40  ;;  %v1881_v27 = vsel %vm1594_vm8, %v1787_v51, %v1879_v13  ;;  %v1885_v15 = vrot.slane %v3776_v16, %v3475_v35  ;;  %v1800_v59 = vsel %vm1609_vm9, %v1706_v39, %v1798_v24 }
 0xe6d   :  { %v1891_v44 = vrot.slane %v3737_v18, 5  ;;  %v1784_v36 = vadd.f32 %v1782_v10, %v1772_v41  ;;  %v1794_v60 = vmul.f32 %v3646_v52, %v1788_v42  ;;  %v1863_v4 = vmul.f32 %v1861_v61, %v1857_v11 }
 0xe6e   :  { %v1833_v28 = vadd.f32 %v1831_v31, %v1821_v25  ;;  %v1875_v21 = vmul.f32 %v1873_v49, %v1869_v1  ;;  %v1812_v35 = vsel %vm1624_vm10, %v1718_v32, %v1810_v26  ;;  %v1842_v51 = vrot.slane %v3865_v6, 1 }
 0xe6f   :  { %v1897_v39 = vrot.slane %v3776_v16, %v3491_v45  ;;  %v1796_v8 = vadd.f32 %v1794_v60, %v1784_v36  ;;  %v1806_v12 = vmul.f32 %v3652_v29, %v1800_v59  ;;  %v1887_v9 = vmul.f32 %v1885_v15, %v1881_v27  ;;  %v2463_v60 = vld [vmem:[%s4063_s8] ss:$0 sm:$0xff] }
 0xe70   :  { %v1841_v30 = vadd.f32 %v1839_v55, %v1833_v28  ;;  %v1903_v52 = vrot.slane %v3737_v18, 6  ;;  %v1824_v3 = vsel %vm1639_vm11, %v1730_v47, %v1822_v50  ;;  %v1854_v32 = vrot.slane %v3865_v6, 2 }
 0xe71   :  { %v1893_v45 = vsel %vm1609_vm9, %v1799_v53, %v1891_v44  ;;  %v1808_v55 = vadd.f32 %v1806_v12, %v1796_v8  ;;  %v1818_v29 = vmul.f32 %v3664_v34, %v1812_v35  ;;  %v1909_v13 = vrot.slane %v3776_v16, %v3505_v58 }
 0xe72   :  { %v1853_v38 = vadd.f32 %v1851_v43, %v1841_v30  ;;  %v1915_v23 = vrot.slane %v3737_v18, 7  ;;  %v1844_v46 = vsel %vm1549_vm5, %v1750_v56, %v1842_v51  ;;  %v1866_v47 = vrot.slane %v3865_v6, 3 }
 0xe73   :  { %v1820_v40 = vadd.f32 %v1818_v29, %v1808_v55  ;;  %v1830_v20 = vmul.f32 %v3687_v62, %v1824_v3  ;;  %v1838_v53 = vmul.f32 %v3750_v7, %v3689_v57  ;;  %v1899_v34 = vmul.f32 %v1897_v39, %v1893_v45 }
 0xe74   :  { %v1865_v37 = vadd.f32 %v1863_v4, %v1853_v38  ;;  %v4061_v14 = vrot.slane %v3565_v54, 6  ;;  %v1856_v56 = vsel %vm1564_vm6, %v1762_v33, %v1854_v32  ;;  %v1878_v18 = vrot.slane %v3865_v6, 4 }
 0xe75   :  { %v1921_v62 = vrot.slane %v3776_v16, %v3523_v17  ;;  %v1832_v11 = vadd.f32 %v1830_v20, %v1820_v40  ;;  %v1850_v7 = vmul.f32 %v3804_v0, %v1844_v46  ;;  %v4062_v1 = vrot.slane %v3565_v54, 7 }
 0xe76   :  { %v1905_v58 = vsel %vm1624_vm10, %v4061_v14, %v1903_v52  ;;  %v1877_v63 = vadd.f32 %v1875_v21, %v1865_v37  ;;  %v1868_v25 = vsel %vm1579_vm7, %v1774_v48, %v1866_v47  ;;  %v1890_v33 = vrot.slane %v3865_v6, 5 }
 0xe77   :  { %v1917_v42 = vsel %vm1639_vm11, %v4062_v1, %v1915_v23  ;;  %v1911_v41 = vmul.f32 %v1909_v13, %v1905_v58  ;;  %v1840_v10 = vadd.f32 %v1838_v53, %v1832_v11  ;;  %v1862_v17 = vmul.f32 %v1861_v61, %v1856_v56  ;;  %v1985_v58 = vld [vmem:[%s4064_s14] sm:$0xff]  ;;  %v1986_v56 = vld [vmem:[%s4064_s14 + $0x8] sm:$0xff] }
 0xe78   :  { %v1889_v31 = vadd.f32 %v1887_v9, %v1877_v63  ;;  %v1880_v54 = vsel %vm1594_vm8, %v1786_v2, %v1878_v18  ;;  %v1902_v16 = vrot.slane %v3865_v6, 6  ;;  %v1923_v43 = vmul.f32 %v1921_v62, %v1917_v42  ;;  %v1987_v18 = vld [vmem:[%s4064_s14 + $0x10] sm:$0xff]  ;;  %v1990_v1 = vld [vmem:[%s4064_s14 + $0x28] sm:$0xff] }
 0xe79   :  { %v1852_v27 = vadd.f32 %v1850_v7, %v1840_v10  ;;  %v1874_v59 = vmul.f32 %v1873_v49, %v1868_v25  ;;  %v1892_v48 = vsel %vm1609_vm9, %v1798_v24, %v1890_v33  ;;  %v1914_v28 = vrot.slane %v3865_v6, 7  ;;  %v1989_v7 = vld [vmem:[%s4064_s14 + $0x20] sm:$0xff]  ;;  %v1991_v25 = vld [vmem:[%s4064_s14 + $0x30] sm:$0xff]  ;;  %v1992_v33 = vld [vmem:[%s4064_s14 + $0x38] sm:$0xff] }
 0xe7a   :  { %v1901_v0 = vadd.f32 %v1899_v34, %v1889_v31  ;;  %v1886_v36 = vmul.f32 %v1885_v15, %v1880_v54  ;;  %v1904_v2 = vsel %vm1624_vm10, %v1810_v26, %v1902_v16  ;;  %v1898_v35 = vmul.f32 %v1897_v39, %v1892_v48  ;;  %v2466_v48 = vld [vmem:[%s4065_s19] ss:$0 sm:$0xff] }
 0xe7b   :  { %v1864_v61 = vadd.f32 %v1862_v17, %v1852_v27  ;;  %v1916_v49 = vsel %vm1639_vm11, %v1822_v50, %v1914_v28  ;;  %v1910_v6 = vmul.f32 %v1909_v13, %v1904_v2  ;;  %v2845_v63 = vpack.c.bf16 %v1986_v56, %v1985_v58 }
 0xe7c   :  { %v1913_v44 = vadd.f32 %v1911_v41, %v1901_v0  ;;  %v1922_v15 = vmul.f32 %v1921_v62, %v1916_v49  ;;  %v1988_v62 = vld [vmem:[%s4064_s14 + $0x18] sm:$0xff]  ;;  %v2853_v42 = vpack.c.bf16 %v1990_v1, %v1989_v7  ;;  %v2857_v31 = vpack.c.bf16 %v1992_v33, %v1991_v25  ;;  %v2238_v25 = vld [vmem:[%s4070_s16 + $0x28] sm:$0xff] }
 0xe7d   :  { %v1876_v21 = vadd.f32 %v1874_v59, %v1864_v61  ;;  %v2849_v11 = vpack.c.bf16 %v1988_v62, %v1987_v18  ;;  %2846 = vmatprep.subr.bf16.mxu0 %v2845_v63  ;;  %v2233_v18 = vld [vmem:[%s4070_s16] sm:$0xff]  ;;  %v2236_v7 = vld [vmem:[%s4070_s16 + $0x18] sm:$0xff] }
 0xe7e   :  { %v1925_v4 = vadd.f32 %v1923_v43, %v1913_v44  ;;  %2848 = vmatpush3.bf16.msra.mxu0 %v2845_v63  ;;  %v2234_v63 = vld [vmem:[%s4070_s16 + $0x8] sm:$0xff] }
 0xe7f   :  { %v1888_v51 = vadd.f32 %v1886_v36, %v1876_v21  ;;  %2850 = vmatprep.subr.bf16.mxu0 %v2849_v11  ;;  %v2467_v36 = vld [vmem:[%s4066_s24] ss:$0 sm:$0xff]  ;;  %v2869_v62 = vpack.c.bf16 %v2234_v63, %v2233_v18 }
 0xe80   :  { %v1934_v24 = vadd.f32 %v2463_v60, %v1925_v4 }
 0xe81   :  { %v1900_v8 = vadd.f32 %v1898_v35, %v1888_v51 }
 0xe82   :  { %v2465_v30 = vmul.f32 -1.442695, %v1934_v24  ;;  %2852 = vmatpush3.bf16.msra.mxu0 %v2849_v11  ;;  %v2235_v11 = vld [vmem:[%s4070_s16 + $0x10] sm:$0xff] }
 0xe83   :  { %v1912_v12 = vadd.f32 %v1910_v6, %v1900_v8  ;;  %2854 = vmatprep.subr.bf16.mxu0 %v2853_v42  ;;  %v2873_v1 = vpack.c.bf16 %v2236_v7, %v2235_v11  ;;  %v2478_v11 = vld [vmem:[%s3225_s27] ss:$0 sm:$0xff] }
 0xe84   :  { %2985 = vpow2.f32 %v2465_v30 }
 0xe85   :  { %v1924_v9 = vadd.f32 %v1922_v15, %v1912_v12 }
 0xe86   :  { %2856 = vmatpush3.bf16.msra.mxu0 %v2853_v42  ;;  %v2237_v42 = vld [vmem:[%s4070_s16 + $0x20] sm:$0xff] }
 0xe87   :  { %v1933_v52 = vadd.f32 %v2463_v60, %v1924_v9  ;;  %2858 = vmatprep.subr.bf16.mxu0 %v2857_v31  ;;  %v2877_v33 = vpack.c.bf16 %v2238_v25, %v2237_v42  ;;  %v2479_v25 = vld [vmem:[%s3230_s4] ss:$0 sm:$0xff] }
 0xe89   :  { %v2464_v3 = vmul.f32 -1.442695, %v1933_v52 }
 0xe8a   :  { %2860 = vmatpush3.bf16.msra.mxu0 %v2857_v31  ;;  %v2239_v31 = vld [vmem:[%s4070_s16 + $0x30] sm:$0xff] }
 0xe8b   :  { %2987 = vpow2.f32 %v2464_v3 }
 0xe8e   :  { %v2986_v26 = vpop.eup %2985 }
 0xe8f   :  { %v1942_v32 = vadd.f32 1.0, %v2986_v26  ;;  %v2127_v26 = vld [vmem:[%s4067_s30] sm:$0xff] }
 0xe91   :  { %2989 = vrcp.f32 %v1942_v32  ;;  %v2128_v32 = vld [vmem:[%s4067_s30 + $0x8] sm:$0xff] }
 0xe95   :  { %v2988_v39 = vpop.eup %2987 }
 0xe96   :  { %v1941_v57 = vadd.f32 1.0, %v2988_v39  ;;  %v2129_v39 = vld [vmem:[%s4067_s30 + $0x10] sm:$0xff] }
 0xe98   :  { %2991 = vrcp.f32 %v1941_v57  ;;  %v2861_v57 = vpack.c.bf16 %v2128_v32, %v2127_v26 }
 0xe9a   :  { %2862 = vmatprep.subr.bf16.mxu1 %v2861_v57 }
 0xe9b   :  { %v2990_v5 = vpop.eup %2989  ;;  %2864 = vmatpush3.bf16.msra.mxu1 %v2861_v57 }
 0xe9c   :  { %v1948_v50 = vmul.f32 %v2990_v5, %v1934_v24  ;;  %v2130_v5 = vld [vmem:[%s4067_s30 + $0x18] sm:$0xff] }
 0xe9e   :  { %v1952_v38 = vsel %vm1517_vm4, %v1948_v50, 0.0 }
 0xe9f   :  { %1953 = vadd.xlane.f32.xlu0 %v1952_v38 }
 0xea2   :  { %v2992_v45 = vpop.eup %2991 }
 0xea3   :  { %v1947_v55 = vmul.f32 %v2992_v45, %v1933_v52 }
 0xea5   :  { %v1949_v29 = vsel %vm1517_vm4, %v1947_v55, 0.0 }
 0xea6   :  { %1950 = vadd.xlane.f32.xlu1 %v1949_v29 }
 0xf2c   :  { %v1954_v13 = vpop.xlane.xlu0 %1953 }
 0xf2d   :  { %v1957_v23 = vmul.f32 0.015625, %v1954_v13 }
 0xf2f   :  { %v1959_v46 = vsub.f32 %v1948_v50, %v1957_v23  ;;  %v2865_v50 = vpack.c.bf16 %v2130_v5, %v2129_v39 }
 0xf31   :  { %v1961_v47 = vmul.f32 %v1959_v46, %v1959_v46  ;;  %2866 = vmatprep.subr.bf16.mxu1 %v2865_v50 }
 0xf32   :  { %2868 = vmatpush3.bf16.msra.mxu1 %v2865_v50 }
 0xf33   :  { %v1965_v37 = vsel %vm1517_vm4, %v1961_v47, 0.0  ;;  %v1951_v40 = vpop.xlane.xlu1 %1950  ;;  %v2470_v47 = vld [vmem:[%s4068_s20] ss:$0 sm:$0xff]  ;;  %2870 = vmatprep.subr.bf16.mxu1 %v2869_v62 }
 0xf34   :  { %1966 = vadd.xlane.f32.xlu1 %v1965_v37  ;;  %v1956_v20 = vmul.f32 0.015625, %v1951_v40 }
 0xf36   :  { %v1958_v53 = vsub.f32 %v1947_v55, %v1956_v20 }
 0xf38   :  { %v1960_v34 = vmul.f32 %v1958_v53, %v1958_v53 }
 0xf3a   :  { %v1962_v14 = vsel %vm1517_vm4, %v1960_v34, 0.0 }
 0xf3b   :  { %1963 = vadd.xlane.f32.xlu0 %v1962_v14 }
 0xfc1   :  { %v1967_v41 = vpop.xlane.xlu1 %1966 }
 0xfc2   :  { %v1969_v10 = vmul.f32 0.015625, %v1967_v41  ;;  %v2240_v41 = vld [vmem:[%s4070_s16 + $0x38] sm:$0xff] }
 0xfc4   :  { %v1971_v17 = vmax.f32 %v1969_v10, 1e-06  ;;  %v2881_v10 = vpack.c.bf16 %v2240_v41, %v2239_v31 }
 0xfc6   :  { %2993 = vrsqrt.f32 %v1971_v17  ;;  %v2241_v17 = vld [vmem:[%s4070_s16 + $0x40] sm:$0xff] }
 0xfc8   :  { %v1964_v54 = vpop.xlane.xlu0 %1963 }
 0xfc9   :  { %v1968_v16 = vmul.f32 0.015625, %v1964_v54  ;;  %v2242_v54 = vld [vmem:[%s4070_s16 + $0x48] sm:$0xff] }
 0xfcb   :  { %v1970_v0 = vmax.f32 %v1968_v16, 1e-06  ;;  %v2885_v16 = vpack.c.bf16 %v2242_v54, %v2241_v17 }
 0xfcd   :  { %2995 = vrsqrt.f32 %v1970_v0  ;;  %v2243_v0 = vld [vmem:[%s4070_s16 + $0x50] sm:$0xff] }
 0xfd0   :  { %v2994_v43 = vpop.eup %2993 }
 0xfd1   :  { %v1975_v59 = vmul.f32 %v2994_v43, %v1959_v46  ;;  %v2244_v43 = vld [vmem:[%s4070_s16 + $0x58] sm:$0xff] }
 0xfd3   :  { %v1984_v61 = vmul.f32 %v2466_v48, %v1975_v59  ;;  %v2245_v59 = vld [vmem:[%s4070_s16 + $0x60] sm:$0xff] }
 0xfd7   :  { %v2996_v27 = vpop.eup %2995 }
 0xfd8   :  { %v1974_v28 = vmul.f32 %v2996_v27, %v1958_v53  ;;  %v2471_v53 = vld [vmem:[%s4069_s15] ss:$0 sm:$0xff]  ;;  %v2889_v27 = vpack.c.bf16 %v2244_v43, %v2243_v0 }
 0xfda   :  { %v1983_v44 = vmul.f32 %v2466_v48, %v1974_v28  ;;  %v2246_v48 = vld [vmem:[%s4070_s16 + $0x68] sm:$0xff]  ;;  %v2247_v28 = vld [vmem:[%s4070_s16 + $0x70] sm:$0xff] }
 0xfdc   :  { %2724 = vmatprep.mubr.msk.f32.mxu0 %vm1517_vm4, %v1983_v44  ;;  %v2893_v44 = vpack.c.bf16 %v2246_v48, %v2245_v59 }
 0xfdd   :  { %2725 = vmatmul.mubr.msk.f32.vlgmr.msra.gmra.mrb[22].mxu0 %vm1517_vm4, %v1984_v61  ;;  %v2248_v61 = vld [vmem:[%s4070_s16 + $0x78] sm:$0xff] }
0x10b0   :  { %v2726_v60 = vpop.f32.mrb[22].mxu0 }
0x10b1   :  { %v2078_v2 = vadd.f32 %v2726_v60, %v2467_v36  ;;  %v2072_v4 = vpop.f32.mrb[23].mxu0  ;;  %v2472_v60 = vld [vmem:[%s4071_s18] ss:$0 sm:$0xff] }
0x10b2   :  { %v2073_v21 = vadd.f32 %v2467_v36, %v2072_v4  ;;  %v2897_v36 = vpack.c.bf16 %v2248_v61, %v2247_v28 }
0x10b3   :  { %v3974_v35 = vadd.f32 %v2078_v2, %v3371_v19 }
0x10b4   :  { %v3977_v49 = vadd.f32 %v2073_v21, %v3374_v22 }
0x10b5   :  { %v2088_v24 = vsel %vm131_vm0, %v3974_v35, 0.0 }
0x10b6   :  { %2089 = vadd.xlane.f32.xlu1 %v2088_v24  ;;  %v2085_v51 = vsel %vm131_vm0, %v3977_v49, 0.0 }
0x10b7   :  { %2086 = vadd.xlane.f32.xlu0 %v2085_v51 }
0x1143   :  { %v2090_v6 = vpop.xlane.xlu1 %2089 }
0x1144   :  { %v2092_v30 = vmul.f32 0.03125, %v2090_v6  ;;  %v2087_v8 = vpop.xlane.xlu0 %2086 }
0x1145   :  { %v2091_v19 = vmul.f32 0.03125, %v2087_v8 }
0x1146   :  { %v2094_v15 = vsub.f32 %v3974_v35, %v2092_v30 }
0x1147   :  { %v2093_v22 = vsub.f32 %v3977_v49, %v2091_v19 }
0x1148   :  { %v2096_v12 = vmul.f32 %v2094_v15, %v2094_v15 }
0x1149   :  { %v2095_v9 = vmul.f32 %v2093_v22, %v2093_v22 }
0x114a   :  { %v2100_v52 = vsel %vm131_vm0, %v2096_v12, 0.0 }
0x114b   :  { %2101 = vadd.xlane.f32.xlu1 %v2100_v52  ;;  %v2097_v3 = vsel %vm131_vm0, %v2095_v9, 0.0 }
0x114c   :  { %2098 = vadd.xlane.f32.xlu0 %v2097_v3  ;;  %v2477_v3 = vld [vmem:[%s3220_s6] ss:$0 sm:$0xff]  ;;  %s3074_s6 = smov [#allocation3]  }
0x114d   :  { %s2386_s22 = sshll.u32 %s3074_s6, 4  ;;  %s2387_s22 = int_to_ptr.vmem [resolvable:$true] %s2386_s22 }
0x114e   :  { %s3013_s23 = scalar_lea.vmem %s2387_s22, 256  ;;  %p3018_p1 = scmp.lt.s32.totalorder %s2387_s22, %s2387_s22 }
0x114f   :  { %p3014_p0 = scmp.ne.s32.totalorder %s2387_s22, %s3013_s23  ;;  %p3019_p2 = scmp.lt.s32.totalorder %s3013_s23, %s3013_s23 }
0x1151   :  { %p3020_p3 = por %p3019_p2, %p3018_p1 }
0x1153   :  { %p3021_p4 = pnand %p3020_p3, %p3014_p0 }
0x11d8   :  { %v2102_v38 = vpop.xlane.xlu1 %2101 }
0x11d9   :  { %v2104_v45 = vmul.f32 0.03125, %v2102_v38  ;;  %v2099_v55 = vpop.xlane.xlu0 %2098 }
0x11da   :  { %v2103_v29 = vmul.f32 0.03125, %v2099_v55 }
0x11db   :  { %v2106_v13 = vadd.f32 1e-05, %v2104_v45 }
0x11dc   :  { %v2105_v23 = vadd.f32 1e-05, %v2103_v29 }
0x11dd   :  { %2997 = vrsqrt.f32 %v2106_v13 }
0x11de   :  { %2999 = vrsqrt.f32 %v2105_v23 }
0x11e7   :  { %v2998_v46 = vpop.eup %2997 }
0x11e8   :  { %v3000_v37 = vpop.eup %2999  ;;  %v2110_v40 = vmul.f32 %v2998_v46, %v2094_v15 }
0x11e9   :  { %v2109_v20 = vmul.f32 %v3000_v37, %v2093_v22 }
0x11ea   :  { %v2118_v34 = vmul.f32 %v2470_v47, %v2110_v40 }
0x11eb   :  { %v2117_v14 = vmul.f32 %v2470_v47, %v2109_v20 }
0x11ec   :  { %v2126_v56 = vadd.f32 %v2471_v53, %v2118_v34 }
0x11ed   :  { %v2125_v58 = vadd.f32 %v2471_v53, %v2117_v14 }
0x11ef   :  { %2735 = vmatprep.mubr.msk.f32.mxu1 %vm131_vm0, %v2125_v58 }
0x11f0   :  { %2736 = vmatmul.mubr.msk.f32.vlgmr.msra.gmra.mrb[6].mxu1 %vm131_vm0, %v2126_v56 }
0x11f1   :  { %2872 = vmatpush3.bf16.msra.mxu1 %v2869_v62 }
0x11f2   :  { %2874 = vmatprep.subr.bf16.mxu1 %v2873_v1 }
0x11f5   :  { %2876 = vmatpush3.bf16.msra.mxu1 %v2873_v1 }
0x11f6   :  { %2878 = vmatprep.subr.bf16.mxu1 %v2877_v33 }
0x11f9   :  { %2880 = vmatpush3.bf16.msra.mxu1 %v2877_v33 }
0x11fa   :  { %2882 = vmatprep.subr.bf16.mxu1 %v2881_v10 }
0x11fd   :  { %2884 = vmatpush3.bf16.msra.mxu1 %v2881_v10 }
0x11fe   :  { %2886 = vmatprep.subr.bf16.mxu1 %v2885_v16 }
0x1201   :  { %2888 = vmatpush3.bf16.msra.mxu1 %v2885_v16 }
0x1202   :  { %2890 = vmatprep.subr.bf16.mxu1 %v2889_v27 }
0x1205   :  { %2892 = vmatpush3.bf16.msra.mxu1 %v2889_v27 }
0x1206   :  { %2894 = vmatprep.subr.bf16.mxu1 %v2893_v44 }
0x1209   :  { %2896 = vmatpush3.bf16.msra.mxu1 %v2893_v44 }
0x120a   :  { %2898 = vmatprep.subr.bf16.mxu1 %v2897_v36 }
0x120d   :  { %2900 = vmatpush3.bf16.msra.mxu1 %v2897_v36 }
0x12c3   :  { %v2737_v2 = vpop.f32.mrb[6].mxu1 }
0x12c4   :  { %v2216_v4 = vadd.f32 %v2737_v2, %v2472_v60  ;;  %v2210_v21 = vpop.f32.mrb[7].mxu1 }
0x12c5   :  { %v2211_v24 = vadd.f32 %v2472_v60, %v2210_v21 }
0x12c6   :  { %v2476_v51 = vmul.f32 -1.442695, %v2216_v4 }
0x12c7   :  { %v2475_v6 = vmul.f32 -1.442695, %v2211_v24 }
0x12c8   :  { %3001 = vpow2.f32 %v2476_v51 }
0x12c9   :  { %3003 = vpow2.f32 %v2475_v6 }
0x12d2   :  { %v3002_v30 = vpop.eup %3001 }
0x12d3   :  { %v3004_v8 = vpop.eup %3003  ;;  %v2226_v19 = vadd.f32 1.0, %v3002_v30 }
0x12d4   :  { %v2225_v15 = vadd.f32 1.0, %v3004_v8 }
0x12d5   :  { %3005 = vrcp.f32 %v2226_v19 }
0x12d6   :  { %3007 = vrcp.f32 %v2225_v15 }
0x12df   :  { %v3006_v22 = vpop.eup %3005 }
0x12e0   :  { %v3008_v12 = vpop.eup %3007  ;;  %v2232_v52 = vmul.f32 %v3006_v22, %v2216_v4 }
0x12e1   :  { %v2231_v9 = vmul.f32 %v3008_v12, %v2211_v24 }
0x12e3   :  { %2770 = vmatprep.mubr.f32.mxu1 %v2231_v9 }
0x12e4   :  { %2771 = vmatmul.mubr.f32.vlgmr.msra.gmra.mrb[8].mxu1 %v2232_v52 }
0x13b7   :  { %v2772_v26 = vpop.f32.mrb[8].mxu1 }
0x13b8   :  { %v2328_v32 = vadd.f32 %v2772_v26, %v2477_v3  ;;  %v2322_v39 = vpop.f32.mrb[9].mxu1 }
0x13b9   :  { %v2323_v57 = vadd.f32 %v2477_v3, %v2322_v39 }
0x13ba   :  { %v2332_v5 = vmul.f32 0.5, %v2328_v32 }
0x13bb   :  { %v2331_v50 = vmul.f32 0.5, %v2323_v57 }
0x13bc   :  { %v2334_v38 = vadd.f32 %v2332_v5, %v3974_v35 }
0x13bd   :  { %v2333_v45 = vadd.f32 %v2331_v50, %v3977_v49 }
0x13be   :  { %v2340_v55 = vsel %vm131_vm0, %v2334_v38, 0.0 }
0x13bf   :  { %2341 = vadd.xlane.f32.xlu1 %v2340_v55  ;;  %v2337_v29 = vsel %vm131_vm0, %v2333_v45, 0.0 }
0x13c0   :  { %2338 = vadd.xlane.f32.xlu0 %v2337_v29 }
0x144c   :  { %v2342_v13 = vpop.xlane.xlu1 %2341 }
0x144d   :  { %v2344_v23 = vmul.f32 0.03125, %v2342_v13  ;;  %v2339_v46 = vpop.xlane.xlu0 %2338 }
0x144e   :  { %v2343_v47 = vmul.f32 0.03125, %v2339_v46 }
0x144f   :  { %v2346_v37 = vsub.f32 %v2334_v38, %v2344_v23 }
0x1450   :  { %v2345_v40 = vsub.f32 %v2333_v45, %v2343_v47 }
0x1451   :  { %v2348_v20 = vmul.f32 %v2346_v37, %v2346_v37 }
0x1452   :  { %v2347_v53 = vmul.f32 %v2345_v40, %v2345_v40 }
0x1453   :  { %v2352_v34 = vsel %vm131_vm0, %v2348_v20, 0.0 }
0x1454   :  { %2353 = vadd.xlane.f32.xlu1 %v2352_v34  ;;  %v2349_v35 = vsel %vm131_vm0, %v2347_v53, 0.0 }
0x1455   :  { %2350 = vadd.xlane.f32.xlu0 %v2349_v35 }
0x14e1   :  { %v2354_v49 = vpop.xlane.xlu1 %2353 }
0x14e2   :  { %v2356_v14 = vmul.f32 0.03125, %v2354_v49  ;;  %v2351_v58 = vpop.xlane.xlu0 %2350 }
0x14e3   :  { %v2355_v56 = vmul.f32 0.03125, %v2351_v58 }
0x14e4   :  { %v2358_v18 = vadd.f32 1e-05, %v2356_v14 }
0x14e5   :  { %v2357_v63 = vadd.f32 1e-05, %v2355_v56 }
0x14e6   :  { %3009 = vrsqrt.f32 %v2358_v18 }
0x14e7   :  { %3011 = vrsqrt.f32 %v2357_v63 }
0x14f0   :  { %v3010_v62 = vpop.eup %3009 }
0x14f1   :  { %v3012_v7 = vpop.eup %3011  ;;  %v2362_v1 = vmul.f32 %v3010_v62, %v2346_v37 }
0x14f2   :  { %v2361_v42 = vmul.f32 %v3012_v7, %v2345_v40 }
0x14f3   :  { %v2370_v33 = vmul.f32 %v2478_v11, %v2362_v1 }
0x14f4   :  { %v2369_v31 = vmul.f32 %v2478_v11, %v2361_v42 }
0x14f5   :  { %v2378_v41 = vadd.f32 %v2479_v25, %v2370_v33 }
0x14f6   :  { %v2377_v10 = vadd.f32 %v2479_v25, %v2369_v31 }
0x14f7   :  { %2380 = vst.msk [vmem:[#allocation3 + $0x8] sm:$0xff] %vm131_vm0, %v2378_v41 }
0x14f8   :  { %2379 = vst.msk [vmem:[#allocation3] sm:$0xff] %vm131_vm0, %v2377_v10 }
0x14f9   :  { %3024 = shalt.err (!%p3021_p4)
}
0x14fa   :  { %s3025_s27 = scalar_lea.hbm %s3235_s12, 256 }
0x14fb   :  { %p3026_p5 = scmp.ne.s32.totalorder %s3235_s12, %s3025_s27  ;;  %p3029_p6 = scmp.lt.u32.totalorder %s3025_s27, %s3235_s12 }
0x14fd   :  { %p3031_p7 = pnand %p3029_p6, %p3026_p5 }
0x14ff   :  { %3034 = shalt.err (!%p3031_p7)
}
0x1500   :  { %s3075_s4 = smov 128   ;;  %s3076_s26 = smov 8  }
0x1501   :  { %2392 = dma.vmem_to_hbm [thread:$0]  %s2387_s22, 256, %s3235_s12, [#allocation4], %s3075_s4, %s3075_s4, %s3076_s26  }
0x1502   :  { %3035 = dma.done.wait [#allocation4], 256  }
0x1503   :  { %3036 = vsyncadd [#allocation4], 4294967040 }
0x1504   :  { %2396 = vsyncpa [#allocation4], 1 }

</bundles_post_ra>
